<compile_context>
chip_gen: v5e
topology: v5e:2x2
jax: 0.10.0
libtpu: 0.0.40
codegen_flags: <defaults>
</compile_context>

<pallas_src>
import functools

import jax
import jax.numpy as jnp
from jax.experimental import pallas as pl
from jax.experimental.pallas import tpu as pltpu

# Explicit scoped-VMEM budget: >= v5e's 16 MiB default, == v6e/v7x scoped default.
# All tile footprints chosen below stay well inside this on every generation.
_VMEM_LIMIT = 32 * 1024 * 1024


def _pick_tile(dim, prefs):
    for t in prefs:
        if t <= dim and dim % t == 0:
            return t
    return dim  # full dimension is always a legal block size


# ----------------------------- tiled fused linear ------------------------------

def _matmul_kernel(*refs, has_res, has_ln, eps):
    # refs = x, w, b, [res], [ln_g, ln_b], out, acc_scratch
    idx = 0
    x_ref = refs[idx]; idx += 1
    w_ref = refs[idx]; idx += 1
    b_ref = refs[idx]; idx += 1
    res_ref = None
    if has_res:
        res_ref = refs[idx]; idx += 1
    g_ref = beta_ref = None
    if has_ln:
        g_ref = refs[idx]; idx += 1
        beta_ref = refs[idx]; idx += 1
    o_ref = refs[idx]; idx += 1
    acc_ref = refs[idx]

    k = pl.program_id(2)

    @pl.when(k == 0)
    def _():
        acc_ref[...] = jnp.zeros_like(acc_ref)

    # bf16 operands straight from HBM feed the MXU; accumulate in f32.
    acc_ref[...] += jnp.dot(x_ref[...], w_ref[...],
                            preferred_element_type=jnp.float32)

    @pl.when(k == pl.num_programs(2) - 1)
    def _():
        y = acc_ref[...] + b_ref[...].astype(jnp.float32)
        if has_res:
            y = y + res_ref[...].astype(jnp.float32)
        if has_ln:
            mu = jnp.mean(y, axis=-1, keepdims=True)
            yc = y - mu
            var = jnp.mean(yc * yc, axis=-1, keepdims=True)
            y = yc * jax.lax.rsqrt(var + eps)
            y = y * g_ref[...].astype(jnp.float32) + beta_ref[...].astype(jnp.float32)
        o_ref[...] = y.astype(o_ref.dtype)


def linear(x, w, b, *, residual=None, ln=None, eps=1e-5):
    """y = x @ w + b  [+ residual]  [-> LayerNorm(gamma, beta)]   (Pallas, tiled, MXU)."""
    M, K = x.shape
    N = w.shape[1]
    has_res = residual is not None
    has_ln = ln is not None

    # bf16 inputs keep even 512-wide tiles to a few MiB per buffer.
    tm_prefs = (256, 128, 64, 32, 16, 8) if has_ln else (512, 256, 128, 64, 32, 16, 8)
    tm = _pick_tile(M, tm_prefs)
    tk = _pick_tile(K, (512, 256, 128))
    # LayerNorm reduces over the full feature dim -> keep it in one block.
    tn = N if has_ln else _pick_tile(N, (512, 256, 128))

    grid = (M // tm, N // tn, K // tk)

    in_specs = [
        pl.BlockSpec((tm, tk), lambda i, j, k: (i, k)),
        pl.BlockSpec((tk, tn), lambda i, j, k: (k, j)),
        pl.BlockSpec((1, tn), lambda i, j, k: (0, j)),
    ]
    inputs = [x, w, b.reshape(1, N)]
    if has_res:
        in_specs.append(pl.BlockSpec((tm, tn), lambda i, j, k: (i, j)))
        inputs.append(residual)
    if has_ln:
        g, beta = ln
        in_specs.append(pl.BlockSpec((1, tn), lambda i, j, k: (0, j)))
        in_specs.append(pl.BlockSpec((1, tn), lambda i, j, k: (0, j)))
        inputs += [g.reshape(1, N), beta.reshape(1, N)]

    return pl.pallas_call(
        functools.partial(_matmul_kernel, has_res=has_res, has_ln=has_ln, eps=eps),
        grid=grid,
        in_specs=in_specs,
        out_specs=pl.BlockSpec((tm, tn), lambda i, j, k: (i, j)),
        out_shape=jax.ShapeDtypeStruct((M, N), x.dtype),
        scratch_shapes=[pltpu.VMEM((tm, tn), jnp.float32)],
        compiler_params=pltpu.CompilerParams(
            dimension_semantics=("parallel", "parallel", "arbitrary"),
            vmem_limit_bytes=_VMEM_LIMIT),
    )(*inputs)


# ------------------------ flash attention (heads batched) ------------------------

def _flash_attn_kernel(q_ref, k_ref, v_ref, o_ref, m_ref, l_ref, acc_ref):
    ki = pl.program_id(2)

    @pl.when(ki == 0)
    def _():
        m_ref[...] = jnp.full_like(m_ref, -jnp.inf)
        l_ref[...] = jnp.zeros_like(l_ref)
        acc_ref[...] = jnp.zeros_like(acc_ref)

    q = q_ref[0]                                   # (tq, d)  bf16, scale pre-folded
    k = k_ref[0]                                   # (tkv, d) bf16
    v = v_ref[0]                                   # (tkv, d) bf16
    s = jax.lax.dot_general(q, k, (((1,), (1,)), ((), ())),
                            preferred_element_type=jnp.float32)      # (tq, tkv)

    m_prev = m_ref[...]
    m_new = jnp.maximum(m_prev, jnp.max(s, axis=-1, keepdims=True))
    alpha = jnp.exp(m_prev - m_new)
    p = jnp.exp(s - m_new)
    l_ref[...] = alpha * l_ref[...] + jnp.sum(p, axis=-1, keepdims=True)
    acc_ref[...] = alpha * acc_ref[...] + jnp.dot(
        p.astype(jnp.bfloat16), v, preferred_element_type=jnp.float32)
    m_ref[...] = m_new

    @pl.when(ki == pl.num_programs(2) - 1)
    def _():
        o_ref[0] = (acc_ref[...] *
                    pl.reciprocal(l_ref[...], approx=True)).astype(o_ref.dtype)


def flash_attention(q, k, v):
    """q:(BH,N,d), k/v:(BH,M,d) -> (BH,N,d). Online-softmax tiling over the KV axis."""
    BH, N, d = q.shape
    M = k.shape[1]
    tq = _pick_tile(N, (256, 128, 64, 32, 16, 8))
    tkv = _pick_tile(M, (512, 256, 128, 64, 32, 16, 8))

    return pl.pallas_call(
        _flash_attn_kernel,
        grid=(BH, N // tq, M // tkv),
        in_specs=[
            pl.BlockSpec((1, tq, d), lambda b, qi, ki: (b, qi, 0)),
            pl.BlockSpec((1, tkv, d), lambda b, qi, ki: (b, ki, 0)),
            pl.BlockSpec((1, tkv, d), lambda b, qi, ki: (b, ki, 0)),
        ],
        out_specs=pl.BlockSpec((1, tq, d), lambda b, qi, ki: (b, qi, 0)),
        out_shape=jax.ShapeDtypeStruct((BH, N, d), q.dtype),
        scratch_shapes=[pltpu.VMEM((tq, 1), jnp.float32),
                        pltpu.VMEM((tq, 1), jnp.float32),
                        pltpu.VMEM((tq, d), jnp.float32)],
        compiler_params=pltpu.CompilerParams(
            dimension_semantics=("parallel", "parallel", "arbitrary"),
            vmem_limit_bytes=_VMEM_LIMIT),
    )(q, k, v)


# ----------------------------- depthwise conv + GELU ------------------------------

def _dwconv_gelu_kernel(x_ref, w_ref, b_ref, o_ref, pad_ref):
    H = o_ref.shape[1]
    W = o_ref.shape[2]
    Cb = o_ref.shape[3]

    # Build the 1-pixel zero border in VMEM (no wrapper-side padded HBM copy).
    pad_ref[0:1, :, :] = jnp.zeros((1, W + 2, Cb), jnp.float32)
    pad_ref[H + 1:H + 2, :, :] = jnp.zeros((1, W + 2, Cb), jnp.float32)
    pad_ref[:, 0:1, :] = jnp.zeros((H + 2, 1, Cb), jnp.float32)
    pad_ref[:, W + 1:W + 2, :] = jnp.zeros((H + 2, 1, Cb), jnp.float32)
    pad_ref[1:H + 1, 1:W + 1, :] = x_ref[0].astype(jnp.float32)

    w = w_ref[...].astype(jnp.float32)             # (3, 3, Cb)
    acc = jnp.zeros((H, W, Cb), jnp.float32)
    for dy in range(3):
        for dx in range(3):
            acc = acc + pad_ref[dy:dy + H, dx:dx + W, :] * w[dy, dx]
    acc = acc + b_ref[...].astype(jnp.float32)

    # fused GELU epilogue (tanh approximation).
    # TODO(synk): switch to exact-erf GELU (PyTorch nn.GELU default) once erf
    # lowering in Mosaic is verified.
    c0 = 0.7978845608028654  # sqrt(2/pi)
    acc = 0.5 * acc * (1.0 + jnp.tanh(c0 * (acc + 0.044715 * acc * acc * acc)))
    o_ref[0] = acc.astype(o_ref.dtype)


def depthwise_conv3x3_gelu(x, w, b):
    """Depthwise 3x3 conv (padding=1) + GELU. x:(B,H,W,C), w:(3,3,C), b:(C,)."""
    B, H, W, C = x.shape
    # Channel tiling bounds VMEM for large feature maps (per-channel independence
    # means no spatial halo is needed) and keeps lane-dense (128-wide) blocks.
    tc = _pick_tile(C, (256, 128))
    return pl.pallas_call(
        _dwconv_gelu_kernel,
        grid=(B, C // tc),
        in_specs=[
            pl.BlockSpec((1, H, W, tc), lambda i, j: (i, 0, 0, j)),
            pl.BlockSpec((3, 3, tc), lambda i, j: (0, 0, j)),
            pl.BlockSpec((1, 1, tc), lambda i, j: (0, 0, j)),
        ],
        out_specs=pl.BlockSpec((1, H, W, tc), lambda i, j: (i, 0, 0, j)),
        out_shape=jax.ShapeDtypeStruct((B, H, W, C), x.dtype),
        scratch_shapes=[pltpu.VMEM((H + 2, W + 2, tc), jnp.float32)],
        compiler_params=pltpu.CompilerParams(
            dimension_semantics=("parallel", "parallel"),
            vmem_limit_bytes=_VMEM_LIMIT),
    )(x, w, b.reshape(1, 1, C))


# ------------------------------- JAX glue ----------------------------------

def im2col(x, kh, kw, stride, pad):
    """x:(B,H,W,C) -> patches:(B, Ho*Wo, kh*kw*C), flatten order (kh, kw, C)."""
    # TODO(synk): replace with strided-row DMA inside the patch-merge matmul to avoid
    # the ~3x duplicated HBM traffic of materialized overlapping patches.
    B, H, W, C = x.shape
    xp = jnp.pad(x, ((0, 0), (pad, pad), (pad, pad), (0, 0)))
    Ho = (H + 2 * pad - kh) // stride + 1
    Wo = (W + 2 * pad - kw) // stride + 1
    r = (jnp.arange(Ho) * stride)[:, None] + jnp.arange(kh)[None, :]   # (Ho, kh)
    c = (jnp.arange(Wo) * stride)[:, None] + jnp.arange(kw)[None, :]   # (Wo, kw)
    patches = xp[:, r[:, None, :, None], c[None, :, None, :], :]       # (B,Ho,Wo,kh,kw,C)
    return patches.reshape(B, Ho * Wo, kh * kw * C), Ho, Wo


def init_params(key, cfg):
    Cin, C = cfg["in_channels"], cfg["out_channels"]
    P, R, E, L = cfg["patch_size"], cfg["reduction_ratio"], cfg["expansion_factor"], cfg["n_layers"]
    hid = C * E

    def nrm(k, shape):
        # Matmul weights live in bf16 in HBM (halves weight read traffic / VMEM).
        return (0.02 * jax.random.normal(k, shape, jnp.float32)).astype(jnp.bfloat16)

    keys = iter(jax.random.split(key, 10 * L + 4))
    params = {
        "pm_w": nrm(next(keys), (P * P * Cin, C)),
        "pm_b": jnp.zeros((C,), jnp.float32),
        "pm_ln_g": jnp.ones((C,), jnp.float32),
        "pm_ln_b": jnp.zeros((C,), jnp.float32),
        "layers": [],
    }
    for _ in range(L):
        lp = {
            "wq": nrm(next(keys), (C, C)), "bq": jnp.zeros((C,), jnp.float32),
            # fused K|V projection weights
            "wkv": nrm(next(keys), (C, 2 * C)), "bkv": jnp.zeros((2 * C,), jnp.float32),
            "wo": nrm(next(keys), (C, C)), "bo": jnp.zeros((C,), jnp.float32),
            "w1": nrm(next(keys), (C, hid)), "b1": jnp.zeros((hid,), jnp.float32),
            # depthwise weight stays f32 (tiny; accumulation path is f32 VPU).
            "wdw": 0.02 * jax.random.normal(next(keys), (3, 3, hid), jnp.float32),
            "bdw": jnp.zeros((hid,), jnp.float32),
            "w2": nrm(next(keys), (hid, C)), "b2": jnp.zeros((C,), jnp.float32),
            "ln_g": jnp.ones((C,), jnp.float32), "ln_b": jnp.zeros((C,), jnp.float32),
        }
        if R > 1:
            lp["sr_w"] = nrm(next(keys), (R * R * C, C))
            lp["sr_b"] = jnp.zeros((C,), jnp.float32)
            lp["sr_ln_g"] = jnp.ones((C,), jnp.float32)
            lp["sr_ln_b"] = jnp.zeros((C,), jnp.float32)
        params["layers"].append(lp)
    return params


def mix_transformer_encoder_layer(x_nchw, params, cfg):
    B = x_nchw.shape[0]
    C = cfg["out_channels"]
    heads = cfg["num_heads"]
    d = C // heads
    scale = d ** -0.5
    R = cfg["reduction_ratio"]

    # NCHW -> NHWC, single cast to bf16 for all downstream HBM traffic.
    x = jnp.transpose(x_nchw, (0, 2, 3, 1)).astype(jnp.bfloat16)

    # ---- OverlapPatchMerging: strided conv (im2col + fused matmul+LayerNorm) ----
    patches, Ho, Wo = im2col(x, cfg["patch_size"], cfg["patch_size"],
                             cfg["stride"], cfg["padding"])
    N = Ho * Wo
    tok = linear(patches.reshape(B * N, -1), params["pm_w"], params["pm_b"],
                 ln=(params["pm_ln_g"], params["pm_ln_b"]))                  # (B*N, C)

    for lp in params["layers"]:
        # ---- EfficientSelfAttention (residual fused into the output projection) ----
        # Fold the softmax scale into the Q projection (free vs. scaling (N,M) scores).
        wq_s = (lp["wq"].astype(jnp.float32) * scale).astype(jnp.bfloat16)
        bq_s = lp["bq"] * scale
        q = linear(tok, wq_s, bq_s)                                          # (B*N, C)

        if R > 1:
            # spatial-reduction conv: k=R, stride=R (non-overlapping) + fused LayerNorm
            # TODO(synk): handle non-divisible maps (PyTorch floors) and fold this
            # R x R block-gather into the SR matmul's input BlockSpec.
            assert Ho % R == 0 and Wo % R == 0
            xs = tok.reshape(B, Ho, Wo, C)
            xs = xs.reshape(B, Ho // R, R, Wo // R, R, C).transpose(0, 1, 3, 2, 4, 5)
            xs = xs.reshape(B * (Ho // R) * (Wo // R), R * R * C)
            kv_in = linear(xs, lp["sr_w"], lp["sr_b"],
                           ln=(lp["sr_ln_g"], lp["sr_ln_b"]))
            M = (Ho // R) * (Wo // R)
        else:
            kv_in, M = tok, N
        kv = linear(kv_in, lp["wkv"], lp["bkv"])                             # (B*M, 2C)

        # split heads onto a leading (batched) axis for the flash kernel
        qh = q.reshape(B, N, heads, d).transpose(0, 2, 1, 3).reshape(B * heads, N, d)
        kvr = kv.reshape(B, M, 2, heads, d).transpose(2, 0, 3, 1, 4)         # (2,B,h,M,d)
        kh = kvr[0].reshape(B * heads, M, d)
        vh = kvr[1].reshape(B * heads, M, d)
        attn = flash_attention(qh, kh, vh)                                   # (BH, N, d)
        attn = attn.reshape(B, heads, N, d).transpose(0, 2, 1, 3).reshape(B * N, C)

        # output projection with in-kernel residual add:  tok = tok + attn @ wo + bo
        tok = linear(attn, lp["wo"], lp["bo"], residual=tok)

        # ---- MixFFN (residual + final LayerNorm fused into the w2 matmul) ----
        h1 = linear(tok, lp["w1"], lp["b1"])                                 # (B*N, hid)
        hid = h1.shape[-1]
        h = depthwise_conv3x3_gelu(h1.reshape(B, Ho, Wo, hid), lp["wdw"], lp["bdw"])
        # tok = LayerNorm(tok + h @ w2 + b2)
        tok = linear(h.reshape(B * N, hid), lp["w2"], lp["b2"],
                     residual=tok, ln=(lp["ln_g"], lp["ln_b"]))

    # (B, N, C) -> (B, H, W, C) -> NCHW (matches reshape+permute in the PyTorch module)
    out = tok.reshape(B, Ho, Wo, C).transpose(0, 3, 1, 2)
    return out.astype(x_nchw.dtype)


# --------------------------------- main -------------------------------------

if __name__ == "__main__":
    cfg = dict(
        in_channels=4, out_channels=32,
        patch_size=7, stride=4, padding=3,
        n_layers=2, reduction_ratio=2, num_heads=2, expansion_factor=4,
    )
    key = jax.random.PRNGKey(0)
    kx, kp = jax.random.split(key)
    x = jax.random.normal(kx, (2, 4, 16, 16), jnp.float32)  # NCHW input like PyTorch
    params = init_params(kp, cfg)

    fwd = jax.jit(functools.partial(mix_transformer_encoder_layer, cfg=cfg))
    out = fwd(x, params)
    out = jax.block_until_ready(out)
    assert out.shape == (2, 32, 4, 4), out.shape
    assert jnp.all(jnp.isfinite(out))
    print("KERNEL_OK")
</pallas_src>

<mosaic_0001>
module attributes {stable_mosaic.version = 11 : i64} {
  func.func @_matmul_kernel(%arg0: i32, %arg1: i32, %arg2: i32, %arg3: memref<32x196xbf16, #tpu.memory_space<vmem>>, %arg4: memref<196x32xbf16, #tpu.memory_space<vmem>>, %arg5: memref<1x32xf32, #tpu.memory_space<vmem>>, %arg6: memref<1x32xf32, #tpu.memory_space<vmem>>, %arg7: memref<1x32xf32, #tpu.memory_space<vmem>>, %arg8: memref<32x32xbf16, #tpu.memory_space<vmem>>, %arg9: memref<32x32xf32, #tpu.memory_space<vmem>>) attributes {dimension_semantics = [#tpu.dimension_semantics<parallel>, #tpu.dimension_semantics<parallel>, #tpu.dimension_semantics<arbitrary>], iteration_bounds = array<i64: 1, 1, 1>, scalar_prefetch = 0 : i64, scratch_operands = 1 : i64, tpu.core_type = #tpu.core_type<tc>, window_params = [{transform_indices = @transform_0, window_bounds = array<i64: 32, 196>}, {transform_indices = @transform_1, window_bounds = array<i64: 196, 32>}, {transform_indices = @transform_2, window_bounds = array<i64: 1, 32>}, {transform_indices = @transform_3, window_bounds = array<i64: 1, 32>}, {transform_indices = @transform_4, window_bounds = array<i64: 1, 32>}, {transform_indices = @transform_5, window_bounds = array<i64: 32, 32>}]} {
    %c0_i32 = arith.constant 0 : i32
    %0 = arith.cmpi eq, %arg2, %c0_i32 : i32
    %1 = arith.extui %0 : i1 to i32
    %c0_i32_0 = arith.constant 0 : i32
    %2 = arith.cmpi ne, %1, %c0_i32_0 : i32
    scf.if %2 {
      %cst_10 = arith.constant 0.000000e+00 : f32
      %12 = vector.broadcast %cst_10 : f32 to vector<32x32xf32>
      %c0_11 = arith.constant 0 : index
      %c0_12 = arith.constant 0 : index
      %13 = vector.load %arg9[%c0_11, %c0_12] : memref<32x32xf32, #tpu.memory_space<vmem>>, vector<32x32xf32>
      tpu.vector_store %arg9[%c0_11, %c0_12], %12 {strides = array<i32>} : memref<32x32xf32, #tpu.memory_space<vmem>>, vector<32x32xf32>,
    } else {
    }
    %c0 = arith.constant 0 : index
    %c0_1 = arith.constant 0 : index
    %3 = vector.load %arg9[%c0, %c0_1] : memref<32x32xf32, #tpu.memory_space<vmem>>, vector<32x32xf32>
    %c0_2 = arith.constant 0 : index
    %c0_3 = arith.constant 0 : index
    %4 = vector.load %arg3[%c0_2, %c0_3] : memref<32x196xbf16, #tpu.memory_space<vmem>>, vector<32x196xbf16>
    %c0_4 = arith.constant 0 : index
    %c0_5 = arith.constant 0 : index
    %5 = vector.load %arg4[%c0_4, %c0_5] : memref<196x32xbf16, #tpu.memory_space<vmem>>, vector<196x32xbf16>
    %cst = arith.constant dense<0.000000e+00> : vector<32x32xf32>
    %6 = tpu.matmul %4, %5, %cst {dimension_numbers = #tpu.dot_dimension_numbers<[1], [0], [0], [1], [0, 0, 1, 1], [], []>} : vector<32x196xbf16>, vector<196x32xbf16>, vector<32x32xf32> -> vector<32x32xf32>
    %7 = arith.addf %3, %6 : vector<32x32xf32>
    %c0_6 = arith.constant 0 : index
    %c0_7 = arith.constant 0 : index
    %8 = vector.load %arg9[%c0_6, %c0_7] : memref<32x32xf32, #tpu.memory_space<vmem>>, vector<32x32xf32>
    tpu.vector_store %arg9[%c0_6, %c0_7], %7 {strides = array<i32>} : memref<32x32xf32, #tpu.memory_space<vmem>>, vector<32x32xf32>,
    %c0_i32_8 = arith.constant 0 : i32
    %9 = arith.cmpi eq, %arg2, %c0_i32_8 : i32
    %10 = arith.extui %9 : i1 to i32
    %c0_i32_9 = arith.constant 0 : i32
    %11 = arith.cmpi ne, %10, %c0_i32_9 : i32
    scf.if %11 {
      %c0_10 = arith.constant 0 : index
      %c0_11 = arith.constant 0 : index
      %12 = vector.load %arg9[%c0_10, %c0_11] : memref<32x32xf32, #tpu.memory_space<vmem>>, vector<32x32xf32>
      %c0_12 = arith.constant 0 : index
      %c0_13 = arith.constant 0 : index
      %13 = vector.load %arg5[%c0_12, %c0_13] : memref<1x32xf32, #tpu.memory_space<vmem>>, vector<1x32xf32>
      %14 = vector.broadcast %13 : vector<1x32xf32> to vector<32x32xf32>
      %15 = arith.addf %12, %14 : vector<32x32xf32>
      %cst_14 = arith.constant dense<0.000000e+00> : vector<32xf32>
      %16 = vector.multi_reduction <add>, %15, %cst_14 [1] : vector<32x32xf32> to vector<32xf32>
      %17 = vector.shape_cast %16 : vector<32xf32> to vector<32x1xf32>
      %cst_15 = arith.constant 3.200000e+01 : f32
      %18 = vector.broadcast %cst_15 : f32 to vector<32x1xf32>
      %19 = arith.divf %17, %18 : vector<32x1xf32>
      %20 = vector.broadcast %19 : vector<32x1xf32> to vector<32x32xf32>
      %21 = arith.subf %15, %20 : vector<32x32xf32>
      %22 = arith.mulf %21, %21 : vector<32x32xf32>
      %cst_16 = arith.constant dense<0.000000e+00> : vector<32xf32>
      %23 = vector.multi_reduction <add>, %22, %cst_16 [1] : vector<32x32xf32> to vector<32xf32>
      %24 = vector.shape_cast %23 : vector<32xf32> to vector<32x1xf32>
      %cst_17 = arith.constant 3.200000e+01 : f32
      %25 = vector.broadcast %cst_17 : f32 to vector<32x1xf32>
      %26 = arith.divf %24, %25 : vector<32x1xf32>
      %cst_18 = arith.constant 9.99999974E-6 : f32
      %27 = vector.broadcast %cst_18 : f32 to vector<32x1xf32>
      %28 = arith.addf %26, %27 : vector<32x1xf32>
      %29 = math.rsqrt %28 : vector<32x1xf32>
      %30 = vector.broadcast %29 : vector<32x1xf32> to vector<32x32xf32>
      %31 = arith.mulf %21, %30 : vector<32x32xf32>
      %c0_19 = arith.constant 0 : index
      %c0_20 = arith.constant 0 : index
      %32 = vector.load %arg6[%c0_19, %c0_20] : memref<1x32xf32, #tpu.memory_space<vmem>>, vector<1x32xf32>
      %33 = vector.broadcast %32 : vector<1x32xf32> to vector<32x32xf32>
      %34 = arith.mulf %31, %33 : vector<32x32xf32>
      %c0_21 = arith.constant 0 : index
      %c0_22 = arith.constant 0 : index
      %35 = vector.load %arg7[%c0_21, %c0_22] : memref<1x32xf32, #tpu.memory_space<vmem>>, vector<1x32xf32>
      %36 = vector.broadcast %35 : vector<1x32xf32> to vector<32x32xf32>
      %37 = arith.addf %34, %36 : vector<32x32xf32>
      %38 = arith.truncf %37 : vector<32x32xf32> to vector<32x32xbf16>
      %c0_23 = arith.constant 0 : index
      %c0_24 = arith.constant 0 : index
      %39 = vector.load %arg8[%c0_23, %c0_24] : memref<32x32xbf16, #tpu.memory_space<vmem>>, vector<32x32xbf16>
      tpu.vector_store %arg8[%c0_23, %c0_24], %38 {strides = array<i32>} : memref<32x32xbf16, #tpu.memory_space<vmem>>, vector<32x32xbf16>,
    } else {
    }
    return
  }
  func.func @transform_0(%arg0: i32, %arg1: i32, %arg2: i32) -> (i32, i32) {
    %c0_i32 = arith.constant 0 : i32
    return %arg0, %arg2 : i32, i32
  }
  func.func @transform_1(%arg0: i32, %arg1: i32, %arg2: i32) -> (i32, i32) {
    %c0_i32 = arith.constant 0 : i32
    return %arg2, %arg1 : i32, i32
  }
  func.func @transform_2(%arg0: i32, %arg1: i32, %arg2: i32) -> (i32, i32) {
    %c0_i32 = arith.constant 0 : i32
    %c0_i32_0 = arith.constant 0 : i32
    return %c0_i32, %arg1 : i32, i32
  }
  func.func @transform_3(%arg0: i32, %arg1: i32, %arg2: i32) -> (i32, i32) {
    %c0_i32 = arith.constant 0 : i32
    %c0_i32_0 = arith.constant 0 : i32
    return %c0_i32, %arg1 : i32, i32
  }
  func.func @transform_4(%arg0: i32, %arg1: i32, %arg2: i32) -> (i32, i32) {
    %c0_i32 = arith.constant 0 : i32
    %c0_i32_0 = arith.constant 0 : i32
    return %c0_i32, %arg1 : i32, i32
  }
  func.func @transform_5(%arg0: i32, %arg1: i32, %arg2: i32) -> (i32, i32) {
    %c0_i32 = arith.constant 0 : i32
    return %arg0, %arg1 : i32, i32
  }
}

module attributes {stable_mosaic.version = 11 : i64} {
  func.func @_matmul_kernel(%arg0: i32, %arg1: i32, %arg2: i32, %arg3: memref<8x128xbf16, #tpu.memory_space<vmem>>, %arg4: memref<128x32xbf16, #tpu.memory_space<vmem>>, %arg5: memref<1x32xf32, #tpu.memory_space<vmem>>, %arg6: memref<1x32xf32, #tpu.memory_space<vmem>>, %arg7: memref<1x32xf32, #tpu.memory_space<vmem>>, %arg8: memref<8x32xbf16, #tpu.memory_space<vmem>>, %arg9: memref<8x32xf32, #tpu.memory_space<vmem>>) attributes {dimension_semantics = [#tpu.dimension_semantics<parallel>, #tpu.dimension_semantics<parallel>, #tpu.dimension_semantics<arbitrary>], iteration_bounds = array<i64: 1, 1, 1>, scalar_prefetch = 0 : i64, scratch_operands = 1 : i64, tpu.core_type = #tpu.core_type<tc>, window_params = [{transform_indices = @transform_0, window_bounds = array<i64: 8, 128>}, {transform_indices = @transform_1, window_bounds = array<i64: 128, 32>}, {transform_indices = @transform_2, window_bounds = array<i64: 1, 32>}, {transform_indices = @transform_3, window_bounds = array<i64: 1, 32>}, {transform_indices = @transform_4, window_bounds = array<i64: 1, 32>}, {transform_indices = @transform_5, window_bounds = array<i64: 8, 32>}]} {
    %c0_i32 = arith.constant 0 : i32
    %0 = arith.cmpi eq, %arg2, %c0_i32 : i32
    %1 = arith.extui %0 : i1 to i32
    %c0_i32_0 = arith.constant 0 : i32
    %2 = arith.cmpi ne, %1, %c0_i32_0 : i32
    scf.if %2 {
      %cst_10 = arith.constant 0.000000e+00 : f32
      %12 = vector.broadcast %cst_10 : f32 to vector<8x32xf32>
      %c0_11 = arith.constant 0 : index
      %c0_12 = arith.constant 0 : index
      %13 = vector.load %arg9[%c0_11, %c0_12] : memref<8x32xf32, #tpu.memory_space<vmem>>, vector<8x32xf32>
      tpu.vector_store %arg9[%c0_11, %c0_12], %12 {strides = array<i32>} : memref<8x32xf32, #tpu.memory_space<vmem>>, vector<8x32xf32>,
    } else {
    }
    %c0 = arith.constant 0 : index
    %c0_1 = arith.constant 0 : index
    %3 = vector.load %arg9[%c0, %c0_1] : memref<8x32xf32, #tpu.memory_space<vmem>>, vector<8x32xf32>
    %c0_2 = arith.constant 0 : index
    %c0_3 = arith.constant 0 : index
    %4 = vector.load %arg3[%c0_2, %c0_3] : memref<8x128xbf16, #tpu.memory_space<vmem>>, vector<8x128xbf16>
    %c0_4 = arith.constant 0 : index
    %c0_5 = arith.constant 0 : index
    %5 = vector.load %arg4[%c0_4, %c0_5] : memref<128x32xbf16, #tpu.memory_space<vmem>>, vector<128x32xbf16>
    %cst = arith.constant dense<0.000000e+00> : vector<8x32xf32>
    %6 = tpu.matmul %4, %5, %cst {dimension_numbers = #tpu.dot_dimension_numbers<[1], [0], [0], [1], [0, 0, 1, 1], [], []>} : vector<8x128xbf16>, vector<128x32xbf16>, vector<8x32xf32> -> vector<8x32xf32>
    %7 = arith.addf %3, %6 : vector<8x32xf32>
    %c0_6 = arith.constant 0 : index
    %c0_7 = arith.constant 0 : index
    %8 = vector.load %arg9[%c0_6, %c0_7] : memref<8x32xf32, #tpu.memory_space<vmem>>, vector<8x32xf32>
    tpu.vector_store %arg9[%c0_6, %c0_7], %7 {strides = array<i32>} : memref<8x32xf32, #tpu.memory_space<vmem>>, vector<8x32xf32>,
    %c0_i32_8 = arith.constant 0 : i32
    %9 = arith.cmpi eq, %arg2, %c0_i32_8 : i32
    %10 = arith.extui %9 : i1 to i32
    %c0_i32_9 = arith.constant 0 : i32
    %11 = arith.cmpi ne, %10, %c0_i32_9 : i32
    scf.if %11 {
      %c0_10 = arith.constant 0 : index
      %c0_11 = arith.constant 0 : index
      %12 = vector.load %arg9[%c0_10, %c0_11] : memref<8x32xf32, #tpu.memory_space<vmem>>, vector<8x32xf32>
      %c0_12 = arith.constant 0 : index
      %c0_13 = arith.constant 0 : index
      %13 = vector.load %arg5[%c0_12, %c0_13] : memref<1x32xf32, #tpu.memory_space<vmem>>, vector<1x32xf32>
      %14 = vector.broadcast %13 : vector<1x32xf32> to vector<8x32xf32>
      %15 = arith.addf %12, %14 : vector<8x32xf32>
      %cst_14 = arith.constant dense<0.000000e+00> : vector<8xf32>
      %16 = vector.multi_reduction <add>, %15, %cst_14 [1] : vector<8x32xf32> to vector<8xf32>
      %17 = vector.shape_cast %16 : vector<8xf32> to vector<8x1xf32>
      %cst_15 = arith.constant 3.200000e+01 : f32
      %18 = vector.broadcast %cst_15 : f32 to vector<8x1xf32>
      %19 = arith.divf %17, %18 : vector<8x1xf32>
      %20 = vector.broadcast %19 : vector<8x1xf32> to vector<8x32xf32>
      %21 = arith.subf %15, %20 : vector<8x32xf32>
      %22 = arith.mulf %21, %21 : vector<8x32xf32>
      %cst_16 = arith.constant dense<0.000000e+00> : vector<8xf32>
      %23 = vector.multi_reduction <add>, %22, %cst_16 [1] : vector<8x32xf32> to vector<8xf32>
      %24 = vector.shape_cast %23 : vector<8xf32> to vector<8x1xf32>
      %cst_17 = arith.constant 3.200000e+01 : f32
      %25 = vector.broadcast %cst_17 : f32 to vector<8x1xf32>
      %26 = arith.divf %24, %25 : vector<8x1xf32>
      %cst_18 = arith.constant 9.99999974E-6 : f32
      %27 = vector.broadcast %cst_18 : f32 to vector<8x1xf32>
      %28 = arith.addf %26, %27 : vector<8x1xf32>
      %29 = math.rsqrt %28 : vector<8x1xf32>
      %30 = vector.broadcast %29 : vector<8x1xf32> to vector<8x32xf32>
      %31 = arith.mulf %21, %30 : vector<8x32xf32>
      %c0_19 = arith.constant 0 : index
      %c0_20 = arith.constant 0 : index
      %32 = vector.load %arg6[%c0_19, %c0_20] : memref<1x32xf32, #tpu.memory_space<vmem>>, vector<1x32xf32>
      %33 = vector.broadcast %32 : vector<1x32xf32> to vector<8x32xf32>
      %34 = arith.mulf %31, %33 : vector<8x32xf32>
      %c0_21 = arith.constant 0 : index
      %c0_22 = arith.constant 0 : index
      %35 = vector.load %arg7[%c0_21, %c0_22] : memref<1x32xf32, #tpu.memory_space<vmem>>, vector<1x32xf32>
      %36 = vector.broadcast %35 : vector<1x32xf32> to vector<8x32xf32>
      %37 = arith.addf %34, %36 : vector<8x32xf32>
      %38 = arith.truncf %37 : vector<8x32xf32> to vector<8x32xbf16>
      %c0_23 = arith.constant 0 : index
      %c0_24 = arith.constant 0 : index
      %39 = vector.load %arg8[%c0_23, %c0_24] : memref<8x32xbf16, #tpu.memory_space<vmem>>, vector<8x32xbf16>
      tpu.vector_store %arg8[%c0_23, %c0_24], %38 {strides = array<i32>} : memref<8x32xbf16, #tpu.memory_space<vmem>>, vector<8x32xbf16>,
    } else {
    }
    return
  }
  func.func @transform_0(%arg0: i32, %arg1: i32, %arg2: i32) -> (i32, i32) {
    %c0_i32 = arith.constant 0 : i32
    return %arg0, %arg2 : i32, i32
  }
  func.func @transform_1(%arg0: i32, %arg1: i32, %arg2: i32) -> (i32, i32) {
    %c0_i32 = arith.constant 0 : i32
    return %arg2, %arg1 : i32, i32
  }
  func.func @transform_2(%arg0: i32, %arg1: i32, %arg2: i32) -> (i32, i32) {
    %c0_i32 = arith.constant 0 : i32
    %c0_i32_0 = arith.constant 0 : i32
    return %c0_i32, %arg1 : i32, i32
  }
  func.func @transform_3(%arg0: i32, %arg1: i32, %arg2: i32) -> (i32, i32) {
    %c0_i32 = arith.constant 0 : i32
    %c0_i32_0 = arith.constant 0 : i32
    return %c0_i32, %arg1 : i32, i32
  }
  func.func @transform_4(%arg0: i32, %arg1: i32, %arg2: i32) -> (i32, i32) {
    %c0_i32 = arith.constant 0 : i32
    %c0_i32_0 = arith.constant 0 : i32
    return %c0_i32, %arg1 : i32, i32
  }
  func.func @transform_5(%arg0: i32, %arg1: i32, %arg2: i32) -> (i32, i32) {
    %c0_i32 = arith.constant 0 : i32
    return %arg0, %arg1 : i32, i32
  }
}

module attributes {stable_mosaic.version = 11 : i64} {
  func.func @_matmul_kernel(%arg0: i32, %arg1: i32, %arg2: i32, %arg3: memref<8x32xbf16, #tpu.memory_space<vmem>>, %arg4: memref<32x64xbf16, #tpu.memory_space<vmem>>, %arg5: memref<1x64xf32, #tpu.memory_space<vmem>>, %arg6: memref<8x64xbf16, #tpu.memory_space<vmem>>, %arg7: memref<8x64xf32, #tpu.memory_space<vmem>>) attributes {dimension_semantics = [#tpu.dimension_semantics<parallel>, #tpu.dimension_semantics<parallel>, #tpu.dimension_semantics<arbitrary>], iteration_bounds = array<i64: 1, 1, 1>, scalar_prefetch = 0 : i64, scratch_operands = 1 : i64, tpu.core_type = #tpu.core_type<tc>, window_params = [{transform_indices = @transform_0, window_bounds = array<i64: 8, 32>}, {transform_indices = @transform_1, window_bounds = array<i64: 32, 64>}, {transform_indices = @transform_2, window_bounds = array<i64: 1, 64>}, {transform_indices = @transform_3, window_bounds = array<i64: 8, 64>}]} {
    %c0_i32 = arith.constant 0 : i32
    %0 = arith.cmpi eq, %arg2, %c0_i32 : i32
    %1 = arith.extui %0 : i1 to i32
    %c0_i32_0 = arith.constant 0 : i32
    %2 = arith.cmpi ne, %1, %c0_i32_0 : i32
    scf.if %2 {
      %cst_10 = arith.constant 0.000000e+00 : f32
      %12 = vector.broadcast %cst_10 : f32 to vector<8x64xf32>
      %c0_11 = arith.constant 0 : index
      %c0_12 = arith.constant 0 : index
      %13 = vector.load %arg7[%c0_11, %c0_12] : memref<8x64xf32, #tpu.memory_space<vmem>>, vector<8x64xf32>
      tpu.vector_store %arg7[%c0_11, %c0_12], %12 {strides = array<i32>} : memref<8x64xf32, #tpu.memory_space<vmem>>, vector<8x64xf32>,
    } else {
    }
    %c0 = arith.constant 0 : index
    %c0_1 = arith.constant 0 : index
    %3 = vector.load %arg7[%c0, %c0_1] : memref<8x64xf32, #tpu.memory_space<vmem>>, vector<8x64xf32>
    %c0_2 = arith.constant 0 : index
    %c0_3 = arith.constant 0 : index
    %4 = vector.load %arg3[%c0_2, %c0_3] : memref<8x32xbf16, #tpu.memory_space<vmem>>, vector<8x32xbf16>
    %c0_4 = arith.constant 0 : index
    %c0_5 = arith.constant 0 : index
    %5 = vector.load %arg4[%c0_4, %c0_5] : memref<32x64xbf16, #tpu.memory_space<vmem>>, vector<32x64xbf16>
    %cst = arith.constant dense<0.000000e+00> : vector<8x64xf32>
    %6 = tpu.matmul %4, %5, %cst {dimension_numbers = #tpu.dot_dimension_numbers<[1], [0], [0], [1], [0, 0, 1, 1], [], []>} : vector<8x32xbf16>, vector<32x64xbf16>, vector<8x64xf32> -> vector<8x64xf32>
    %7 = arith.addf %3, %6 : vector<8x64xf32>
    %c0_6 = arith.constant 0 : index
    %c0_7 = arith.constant 0 : index
    %8 = vector.load %arg7[%c0_6, %c0_7] : memref<8x64xf32, #tpu.memory_space<vmem>>, vector<8x64xf32>
    tpu.vector_store %arg7[%c0_6, %c0_7], %7 {strides = array<i32>} : memref<8x64xf32, #tpu.memory_space<vmem>>, vector<8x64xf32>,
    %c0_i32_8 = arith.constant 0 : i32
    %9 = arith.cmpi eq, %arg2, %c0_i32_8 : i32
    %10 = arith.extui %9 : i1 to i32
    %c0_i32_9 = arith.constant 0 : i32
    %11 = arith.cmpi ne, %10, %c0_i32_9 : i32
    scf.if %11 {
      %c0_10 = arith.constant 0 : index
      %c0_11 = arith.constant 0 : index
      %12 = vector.load %arg7[%c0_10, %c0_11] : memref<8x64xf32, #tpu.memory_space<vmem>>, vector<8x64xf32>
      %c0_12 = arith.constant 0 : index
      %c0_13 = arith.constant 0 : index
      %13 = vector.load %arg5[%c0_12, %c0_13] : memref<1x64xf32, #tpu.memory_space<vmem>>, vector<1x64xf32>
      %14 = vector.broadcast %13 : vector<1x64xf32> to vector<8x64xf32>
      %15 = arith.addf %12, %14 : vector<8x64xf32>
      %16 = arith.truncf %15 : vector<8x64xf32> to vector<8x64xbf16>
      %c0_14 = arith.constant 0 : index
      %c0_15 = arith.constant 0 : index
      %17 = vector.load %arg6[%c0_14, %c0_15] : memref<8x64xbf16, #tpu.memory_space<vmem>>, vector<8x64xbf16>
      tpu.vector_store %arg6[%c0_14, %c0_15], %16 {strides = array<i32>} : memref<8x64xbf16, #tpu.memory_space<vmem>>, vector<8x64xbf16>,
    } else {
    }
    return
  }
  func.func @transform_0(%arg0: i32, %arg1: i32, %arg2: i32) -> (i32, i32) {
    %c0_i32 = arith.constant 0 : i32
    return %arg0, %arg2 : i32, i32
  }
  func.func @transform_1(%arg0: i32, %arg1: i32, %arg2: i32) -> (i32, i32) {
    %c0_i32 = arith.constant 0 : i32
    return %arg2, %arg1 : i32, i32
  }
  func.func @transform_2(%arg0: i32, %arg1: i32, %arg2: i32) -> (i32, i32) {
    %c0_i32 = arith.constant 0 : i32
    %c0_i32_0 = arith.constant 0 : i32
    return %c0_i32, %arg1 : i32, i32
  }
  func.func @transform_3(%arg0: i32, %arg1: i32, %arg2: i32) -> (i32, i32) {
    %c0_i32 = arith.constant 0 : i32
    return %arg0, %arg1 : i32, i32
  }
}

module attributes {stable_mosaic.version = 11 : i64} {
  func.func @_matmul_kernel(%arg0: i32, %arg1: i32, %arg2: i32, %arg3: memref<32x32xbf16, #tpu.memory_space<vmem>>, %arg4: memref<32x32xbf16, #tpu.memory_space<vmem>>, %arg5: memref<1x32xf32, #tpu.memory_space<vmem>>, %arg6: memref<32x32xbf16, #tpu.memory_space<vmem>>, %arg7: memref<32x32xf32, #tpu.memory_space<vmem>>) attributes {dimension_semantics = [#tpu.dimension_semantics<parallel>, #tpu.dimension_semantics<parallel>, #tpu.dimension_semantics<arbitrary>], iteration_bounds = array<i64: 1, 1, 1>, scalar_prefetch = 0 : i64, scratch_operands = 1 : i64, tpu.core_type = #tpu.core_type<tc>, window_params = [{transform_indices = @transform_0, window_bounds = array<i64: 32, 32>}, {transform_indices = @transform_1, window_bounds = array<i64: 32, 32>}, {transform_indices = @transform_2, window_bounds = array<i64: 1, 32>}, {transform_indices = @transform_3, window_bounds = array<i64: 32, 32>}]} {
    %c0_i32 = arith.constant 0 : i32
    %0 = arith.cmpi eq, %arg2, %c0_i32 : i32
    %1 = arith.extui %0 : i1 to i32
    %c0_i32_0 = arith.constant 0 : i32
    %2 = arith.cmpi ne, %1, %c0_i32_0 : i32
    scf.if %2 {
      %cst_10 = arith.constant 0.000000e+00 : f32
      %12 = vector.broadcast %cst_10 : f32 to vector<32x32xf32>
      %c0_11 = arith.constant 0 : index
      %c0_12 = arith.constant 0 : index
      %13 = vector.load %arg7[%c0_11, %c0_12] : memref<32x32xf32, #tpu.memory_space<vmem>>, vector<32x32xf32>
      tpu.vector_store %arg7[%c0_11, %c0_12], %12 {strides = array<i32>} : memref<32x32xf32, #tpu.memory_space<vmem>>, vector<32x32xf32>,
    } else {
    }
    %c0 = arith.constant 0 : index
    %c0_1 = arith.constant 0 : index
    %3 = vector.load %arg7[%c0, %c0_1] : memref<32x32xf32, #tpu.memory_space<vmem>>, vector<32x32xf32>
    %c0_2 = arith.constant 0 : index
    %c0_3 = arith.constant 0 : index
    %4 = vector.load %arg3[%c0_2, %c0_3] : memref<32x32xbf16, #tpu.memory_space<vmem>>, vector<32x32xbf16>
    %c0_4 = arith.constant 0 : index
    %c0_5 = arith.constant 0 : index
    %5 = vector.load %arg4[%c0_4, %c0_5] : memref<32x32xbf16, #tpu.memory_space<vmem>>, vector<32x32xbf16>
    %cst = arith.constant dense<0.000000e+00> : vector<32x32xf32>
    %6 = tpu.matmul %4, %5, %cst {dimension_numbers = #tpu.dot_dimension_numbers<[1], [0], [0], [1], [0, 0, 1, 1], [], []>} : vector<32x32xbf16>, vector<32x32xbf16>, vector<32x32xf32> -> vector<32x32xf32>
    %7 = arith.addf %3, %6 : vector<32x32xf32>
    %c0_6 = arith.constant 0 : index
    %c0_7 = arith.constant 0 : index
    %8 = vector.load %arg7[%c0_6, %c0_7] : memref<32x32xf32, #tpu.memory_space<vmem>>, vector<32x32xf32>
    tpu.vector_store %arg7[%c0_6, %c0_7], %7 {strides = array<i32>} : memref<32x32xf32, #tpu.memory_space<vmem>>, vector<32x32xf32>,
    %c0_i32_8 = arith.constant 0 : i32
    %9 = arith.cmpi eq, %arg2, %c0_i32_8 : i32
    %10 = arith.extui %9 : i1 to i32
    %c0_i32_9 = arith.constant 0 : i32
    %11 = arith.cmpi ne, %10, %c0_i32_9 : i32
    scf.if %11 {
      %c0_10 = arith.constant 0 : index
      %c0_11 = arith.constant 0 : index
      %12 = vector.load %arg7[%c0_10, %c0_11] : memref<32x32xf32, #tpu.memory_space<vmem>>, vector<32x32xf32>
      %c0_12 = arith.constant 0 : index
      %c0_13 = arith.constant 0 : index
      %13 = vector.load %arg5[%c0_12, %c0_13] : memref<1x32xf32, #tpu.memory_space<vmem>>, vector<1x32xf32>
      %14 = vector.broadcast %13 : vector<1x32xf32> to vector<32x32xf32>
      %15 = arith.addf %12, %14 : vector<32x32xf32>
      %16 = arith.truncf %15 : vector<32x32xf32> to vector<32x32xbf16>
      %c0_14 = arith.constant 0 : index
      %c0_15 = arith.constant 0 : index
      %17 = vector.load %arg6[%c0_14, %c0_15] : memref<32x32xbf16, #tpu.memory_space<vmem>>, vector<32x32xbf16>
      tpu.vector_store %arg6[%c0_14, %c0_15], %16 {strides = array<i32>} : memref<32x32xbf16, #tpu.memory_space<vmem>>, vector<32x32xbf16>,
    } else {
    }
    return
  }
  func.func @transform_0(%arg0: i32, %arg1: i32, %arg2: i32) -> (i32, i32) {
    %c0_i32 = arith.constant 0 : i32
    return %arg0, %arg2 : i32, i32
  }
  func.func @transform_1(%arg0: i32, %arg1: i32, %arg2: i32) -> (i32, i32) {
    %c0_i32 = arith.constant 0 : i32
    return %arg2, %arg1 : i32, i32
  }
  func.func @transform_2(%arg0: i32, %arg1: i32, %arg2: i32) -> (i32, i32) {
    %c0_i32 = arith.constant 0 : i32
    %c0_i32_0 = arith.constant 0 : i32
    return %c0_i32, %arg1 : i32, i32
  }
  func.func @transform_3(%arg0: i32, %arg1: i32, %arg2: i32) -> (i32, i32) {
    %c0_i32 = arith.constant 0 : i32
    return %arg0, %arg1 : i32, i32
  }
}

module attributes {stable_mosaic.version = 11 : i64} {
  func.func @_matmul_kernel(%arg0: i32, %arg1: i32, %arg2: i32, %arg3: memref<32x32xbf16, #tpu.memory_space<vmem>>, %arg4: memref<32x32xbf16, #tpu.memory_space<vmem>>, %arg5: memref<1x32xf32, #tpu.memory_space<vmem>>, %arg6: memref<32x32xbf16, #tpu.memory_space<vmem>>, %arg7: memref<32x32xbf16, #tpu.memory_space<vmem>>, %arg8: memref<32x32xf32, #tpu.memory_space<vmem>>) attributes {dimension_semantics = [#tpu.dimension_semantics<parallel>, #tpu.dimension_semantics<parallel>, #tpu.dimension_semantics<arbitrary>], iteration_bounds = array<i64: 1, 1, 1>, scalar_prefetch = 0 : i64, scratch_operands = 1 : i64, tpu.core_type = #tpu.core_type<tc>, window_params = [{transform_indices = @transform_0, window_bounds = array<i64: 32, 32>}, {transform_indices = @transform_1, window_bounds = array<i64: 32, 32>}, {transform_indices = @transform_2, window_bounds = array<i64: 1, 32>}, {transform_indices = @transform_3, window_bounds = array<i64: 32, 32>}, {transform_indices = @transform_4, window_bounds = array<i64: 32, 32>}]} {
    %c0_i32 = arith.constant 0 : i32
    %0 = arith.cmpi eq, %arg2, %c0_i32 : i32
    %1 = arith.extui %0 : i1 to i32
    %c0_i32_0 = arith.constant 0 : i32
    %2 = arith.cmpi ne, %1, %c0_i32_0 : i32
    scf.if %2 {
      %cst_10 = arith.constant 0.000000e+00 : f32
      %12 = vector.broadcast %cst_10 : f32 to vector<32x32xf32>
      %c0_11 = arith.constant 0 : index
      %c0_12 = arith.constant 0 : index
      %13 = vector.load %arg8[%c0_11, %c0_12] : memref<32x32xf32, #tpu.memory_space<vmem>>, vector<32x32xf32>
      tpu.vector_store %arg8[%c0_11, %c0_12], %12 {strides = array<i32>} : memref<32x32xf32, #tpu.memory_space<vmem>>, vector<32x32xf32>,
    } else {
    }
    %c0 = arith.constant 0 : index
    %c0_1 = arith.constant 0 : index
    %3 = vector.load %arg8[%c0, %c0_1] : memref<32x32xf32, #tpu.memory_space<vmem>>, vector<32x32xf32>
    %c0_2 = arith.constant 0 : index
    %c0_3 = arith.constant 0 : index
    %4 = vector.load %arg3[%c0_2, %c0_3] : memref<32x32xbf16, #tpu.memory_space<vmem>>, vector<32x32xbf16>
    %c0_4 = arith.constant 0 : index
    %c0_5 = arith.constant 0 : index
    %5 = vector.load %arg4[%c0_4, %c0_5] : memref<32x32xbf16, #tpu.memory_space<vmem>>, vector<32x32xbf16>
    %cst = arith.constant dense<0.000000e+00> : vector<32x32xf32>
    %6 = tpu.matmul %4, %5, %cst {dimension_numbers = #tpu.dot_dimension_numbers<[1], [0], [0], [1], [0, 0, 1, 1], [], []>} : vector<32x32xbf16>, vector<32x32xbf16>, vector<32x32xf32> -> vector<32x32xf32>
    %7 = arith.addf %3, %6 : vector<32x32xf32>
    %c0_6 = arith.constant 0 : index
    %c0_7 = arith.constant 0 : index
    %8 = vector.load %arg8[%c0_6, %c0_7] : memref<32x32xf32, #tpu.memory_space<vmem>>, vector<32x32xf32>
    tpu.vector_store %arg8[%c0_6, %c0_7], %7 {strides = array<i32>} : memref<32x32xf32, #tpu.memory_space<vmem>>, vector<32x32xf32>,
    %c0_i32_8 = arith.constant 0 : i32
    %9 = arith.cmpi eq, %arg2, %c0_i32_8 : i32
    %10 = arith.extui %9 : i1 to i32
    %c0_i32_9 = arith.constant 0 : i32
    %11 = arith.cmpi ne, %10, %c0_i32_9 : i32
    scf.if %11 {
      %c0_10 = arith.constant 0 : index
      %c0_11 = arith.constant 0 : index
      %12 = vector.load %arg8[%c0_10, %c0_11] : memref<32x32xf32, #tpu.memory_space<vmem>>, vector<32x32xf32>
      %c0_12 = arith.constant 0 : index
      %c0_13 = arith.constant 0 : index
      %13 = vector.load %arg5[%c0_12, %c0_13] : memref<1x32xf32, #tpu.memory_space<vmem>>, vector<1x32xf32>
      %14 = vector.broadcast %13 : vector<1x32xf32> to vector<32x32xf32>
      %15 = arith.addf %12, %14 : vector<32x32xf32>
      %c0_14 = arith.constant 0 : index
      %c0_15 = arith.constant 0 : index
      %16 = vector.load %arg6[%c0_14, %c0_15] : memref<32x32xbf16, #tpu.memory_space<vmem>>, vector<32x32xbf16>
      %17 = arith.extf %16 : vector<32x32xbf16> to vector<32x32xf32>
      %18 = arith.addf %15, %17 : vector<32x32xf32>
      %19 = arith.truncf %18 : vector<32x32xf32> to vector<32x32xbf16>
      %c0_16 = arith.constant 0 : index
      %c0_17 = arith.constant 0 : index
      %20 = vector.load %arg7[%c0_16, %c0_17] : memref<32x32xbf16, #tpu.memory_space<vmem>>, vector<32x32xbf16>
      tpu.vector_store %arg7[%c0_16, %c0_17], %19 {strides = array<i32>} : memref<32x32xbf16, #tpu.memory_space<vmem>>, vector<32x32xbf16>,
    } else {
    }
    return
  }
  func.func @transform_0(%arg0: i32, %arg1: i32, %arg2: i32) -> (i32, i32) {
    %c0_i32 = arith.constant 0 : i32
    return %arg0, %arg2 : i32, i32
  }
  func.func @transform_1(%arg0: i32, %arg1: i32, %arg2: i32) -> (i32, i32) {
    %c0_i32 = arith.constant 0 : i32
    return %arg2, %arg1 : i32, i32
  }
  func.func @transform_2(%arg0: i32, %arg1: i32, %arg2: i32) -> (i32, i32) {
    %c0_i32 = arith.constant 0 : i32
    %c0_i32_0 = arith.constant 0 : i32
    return %c0_i32, %arg1 : i32, i32
  }
  func.func @transform_3(%arg0: i32, %arg1: i32, %arg2: i32) -> (i32, i32) {
    %c0_i32 = arith.constant 0 : i32
    return %arg0, %arg1 : i32, i32
  }
  func.func @transform_4(%arg0: i32, %arg1: i32, %arg2: i32) -> (i32, i32) {
    %c0_i32 = arith.constant 0 : i32
    return %arg0, %arg1 : i32, i32
  }
}

module attributes {stable_mosaic.version = 11 : i64} {
  func.func @_flash_attn_kernel(%arg0: i32, %arg1: i32, %arg2: i32, %arg3: memref<1x16x16xbf16, #tpu.memory_space<vmem>>, %arg4: memref<1x4x16xbf16, #tpu.memory_space<vmem>>, %arg5: memref<1x4x16xbf16, #tpu.memory_space<vmem>>, %arg6: memref<1x16x16xbf16, #tpu.memory_space<vmem>>, %arg7: memref<16x1xf32, #tpu.memory_space<vmem>>, %arg8: memref<16x1xf32, #tpu.memory_space<vmem>>, %arg9: memref<16x16xf32, #tpu.memory_space<vmem>>) attributes {dimension_semantics = [#tpu.dimension_semantics<parallel>, #tpu.dimension_semantics<parallel>, #tpu.dimension_semantics<arbitrary>], iteration_bounds = array<i64: 4, 1, 1>, scalar_prefetch = 0 : i64, scratch_operands = 3 : i64, tpu.core_type = #tpu.core_type<tc>, window_params = [{transform_indices = @transform_0, window_bounds = array<i64: 1, 16, 16>}, {transform_indices = @transform_1, window_bounds = array<i64: 1, 4, 16>}, {transform_indices = @transform_2, window_bounds = array<i64: 1, 4, 16>}, {transform_indices = @transform_3, window_bounds = array<i64: 1, 16, 16>}]} {
    %c0_i32 = arith.constant 0 : i32
    %0 = arith.cmpi eq, %arg2, %c0_i32 : i32
    %1 = arith.extui %0 : i1 to i32
    %c0_i32_0 = arith.constant 0 : i32
    %2 = arith.cmpi ne, %1, %c0_i32_0 : i32
    scf.if %2 {
      %cst_26 = arith.constant 0xFF800000 : f32
      %36 = vector.broadcast %cst_26 : f32 to vector<16x1xf32>
      %c0_27 = arith.constant 0 : index
      %c0_28 = arith.constant 0 : index
      %37 = vector.load %arg7[%c0_27, %c0_28] : memref<16x1xf32, #tpu.memory_space<vmem>>, vector<16x1xf32>
      tpu.vector_store %arg7[%c0_27, %c0_28], %36 {strides = array<i32>} : memref<16x1xf32, #tpu.memory_space<vmem>>, vector<16x1xf32>,
      %cst_29 = arith.constant 0.000000e+00 : f32
      %38 = vector.broadcast %cst_29 : f32 to vector<16x1xf32>
      %c0_30 = arith.constant 0 : index
      %c0_31 = arith.constant 0 : index
      %39 = vector.load %arg8[%c0_30, %c0_31] : memref<16x1xf32, #tpu.memory_space<vmem>>, vector<16x1xf32>
      tpu.vector_store %arg8[%c0_30, %c0_31], %38 {strides = array<i32>} : memref<16x1xf32, #tpu.memory_space<vmem>>, vector<16x1xf32>,
      %cst_32 = arith.constant 0.000000e+00 : f32
      %40 = vector.broadcast %cst_32 : f32 to vector<16x16xf32>
      %c0_33 = arith.constant 0 : index
      %c0_34 = arith.constant 0 : index
      %41 = vector.load %arg9[%c0_33, %c0_34] : memref<16x16xf32, #tpu.memory_space<vmem>>, vector<16x16xf32>
      tpu.vector_store %arg9[%c0_33, %c0_34], %40 {strides = array<i32>} : memref<16x16xf32, #tpu.memory_space<vmem>>, vector<16x16xf32>,
    } else {
    }
    %c0 = arith.constant 0 : index
    %c0_1 = arith.constant 0 : index
    %c0_2 = arith.constant 0 : index
    %3 = vector.load %arg3[%c0, %c0_1, %c0_2] : memref<1x16x16xbf16, #tpu.memory_space<vmem>>, vector<1x16x16xbf16>
    %4 = vector.shape_cast %3 : vector<1x16x16xbf16> to vector<16x16xbf16>
    %c0_3 = arith.constant 0 : index
    %c0_4 = arith.constant 0 : index
    %c0_5 = arith.constant 0 : index
    %5 = vector.load %arg4[%c0_3, %c0_4, %c0_5] : memref<1x4x16xbf16, #tpu.memory_space<vmem>>, vector<1x4x16xbf16>
    %6 = vector.shape_cast %5 : vector<1x4x16xbf16> to vector<4x16xbf16>
    %c0_6 = arith.constant 0 : index
    %c0_7 = arith.constant 0 : index
    %c0_8 = arith.constant 0 : index
    %7 = vector.load %arg5[%c0_6, %c0_7, %c0_8] : memref<1x4x16xbf16, #tpu.memory_space<vmem>>, vector<1x4x16xbf16>
    %8 = vector.shape_cast %7 : vector<1x4x16xbf16> to vector<4x16xbf16>
    %cst = arith.constant dense<0.000000e+00> : vector<16x4xf32>
    %9 = tpu.matmul %4, %6, %cst {dimension_numbers = #tpu.dot_dimension_numbers<[1], [1], [0], [0], [0, 0, 1, 0], [], []>} : vector<16x16xbf16>, vector<4x16xbf16>, vector<16x4xf32> -> vector<16x4xf32>
    %c0_9 = arith.constant 0 : index
    %c0_10 = arith.constant 0 : index
    %10 = vector.load %arg7[%c0_9, %c0_10] : memref<16x1xf32, #tpu.memory_space<vmem>>, vector<16x1xf32>
    %cst_11 = arith.constant dense<0xFF800000> : vector<16xf32>
    %11 = vector.multi_reduction <maximumf>, %9, %cst_11 [1] : vector<16x4xf32> to vector<16xf32>
    %12 = vector.shape_cast %11 : vector<16xf32> to vector<16x1xf32>
    %13 = arith.maximumf %10, %12 : vector<16x1xf32>
    %14 = arith.subf %10, %13 : vector<16x1xf32>
    %15 = math.exp %14 : vector<16x1xf32>
    %16 = vector.broadcast %13 : vector<16x1xf32> to vector<16x4xf32>
    %17 = arith.subf %9, %16 : vector<16x4xf32>
    %18 = math.exp %17 : vector<16x4xf32>
    %c0_12 = arith.constant 0 : index
    %c0_13 = arith.constant 0 : index
    %19 = vector.load %arg8[%c0_12, %c0_13] : memref<16x1xf32, #tpu.memory_space<vmem>>, vector<16x1xf32>
    %20 = arith.mulf %15, %19 : vector<16x1xf32>
    %cst_14 = arith.constant dense<0.000000e+00> : vector<16xf32>
    %21 = vector.multi_reduction <add>, %18, %cst_14 [1] : vector<16x4xf32> to vector<16xf32>
    %22 = vector.shape_cast %21 : vector<16xf32> to vector<16x1xf32>
    %23 = arith.addf %20, %22 : vector<16x1xf32>
    %c0_15 = arith.constant 0 : index
    %c0_16 = arith.constant 0 : index
    %24 = vector.load %arg8[%c0_15, %c0_16] : memref<16x1xf32, #tpu.memory_space<vmem>>, vector<16x1xf32>
    tpu.vector_store %arg8[%c0_15, %c0_16], %23 {strides = array<i32>} : memref<16x1xf32, #tpu.memory_space<vmem>>, vector<16x1xf32>,
    %c0_17 = arith.constant 0 : index
    %c0_18 = arith.constant 0 : index
    %25 = vector.load %arg9[%c0_17, %c0_18] : memref<16x16xf32, #tpu.memory_space<vmem>>, vector<16x16xf32>
    %26 = vector.broadcast %15 : vector<16x1xf32> to vector<16x16xf32>
    %27 = arith.mulf %26, %25 : vector<16x16xf32>
    %28 = arith.truncf %18 : vector<16x4xf32> to vector<16x4xbf16>
    %cst_19 = arith.constant dense<0.000000e+00> : vector<16x16xf32>
    %29 = tpu.matmul %28, %8, %cst_19 {dimension_numbers = #tpu.dot_dimension_numbers<[1], [0], [0], [1], [0, 0, 1, 1], [], []>} : vector<16x4xbf16>, vector<4x16xbf16>, vector<16x16xf32> -> vector<16x16xf32>
    %30 = arith.addf %27, %29 : vector<16x16xf32>
    %c0_20 = arith.constant 0 : index
    %c0_21 = arith.constant 0 : index
    %31 = vector.load %arg9[%c0_20, %c0_21] : memref<16x16xf32, #tpu.memory_space<vmem>>, vector<16x16xf32>
    tpu.vector_store %arg9[%c0_20, %c0_21], %30 {strides = array<i32>} : memref<16x16xf32, #tpu.memory_space<vmem>>, vector<16x16xf32>,
    %c0_22 = arith.constant 0 : index
    %c0_23 = arith.constant 0 : index
    %32 = vector.load %arg7[%c0_22, %c0_23] : memref<16x1xf32, #tpu.memory_space<vmem>>, vector<16x1xf32>
    tpu.vector_store %arg7[%c0_22, %c0_23], %13 {strides = array<i32>} : memref<16x1xf32, #tpu.memory_space<vmem>>, vector<16x1xf32>,
    %c0_i32_24 = arith.constant 0 : i32
    %33 = arith.cmpi eq, %arg2, %c0_i32_24 : i32
    %34 = arith.extui %33 : i1 to i32
    %c0_i32_25 = arith.constant 0 : i32
    %35 = arith.cmpi ne, %34, %c0_i32_25 : i32
    scf.if %35 {
      %c0_26 = arith.constant 0 : index
      %c0_27 = arith.constant 0 : index
      %36 = vector.load %arg9[%c0_26, %c0_27] : memref<16x16xf32, #tpu.memory_space<vmem>>, vector<16x16xf32>
      %c0_28 = arith.constant 0 : index
      %c0_29 = arith.constant 0 : index
      %37 = vector.load %arg8[%c0_28, %c0_29] : memref<16x1xf32, #tpu.memory_space<vmem>>, vector<16x1xf32>
      %38 = tpu.reciprocal %37 {approx = true} : vector<16x1xf32> -> vector<16x1xf32>
      %39 = vector.broadcast %38 : vector<16x1xf32> to vector<16x16xf32>
      %40 = arith.mulf %36, %39 : vector<16x16xf32>
      %41 = arith.truncf %40 : vector<16x16xf32> to vector<16x16xbf16>
      %c0_30 = arith.constant 0 : index
      %c0_31 = arith.constant 0 : index
      %c0_32 = arith.constant 0 : index
      %42 = vector.load %arg6[%c0_30, %c0_31, %c0_32] : memref<1x16x16xbf16, #tpu.memory_space<vmem>>, vector<1x16x16xbf16>
      %43 = vector.shape_cast %42 : vector<1x16x16xbf16> to vector<16x16xbf16>
      %44 = vector.shape_cast %41 : vector<16x16xbf16> to vector<1x16x16xbf16>
      tpu.vector_store %arg6[%c0_30, %c0_31, %c0_32], %44 {strides = array<i32>} : memref<1x16x16xbf16, #tpu.memory_space<vmem>>, vector<1x16x16xbf16>,
    } else {
    }
    return
  }
  func.func @transform_0(%arg0: i32, %arg1: i32, %arg2: i32) -> (i32, i32, i32) {
    %c0_i32 = arith.constant 0 : i32
    %c0_i32_0 = arith.constant 0 : i32
    return %arg0, %arg1, %c0_i32 : i32, i32, i32
  }
  func.func @transform_1(%arg0: i32, %arg1: i32, %arg2: i32) -> (i32, i32, i32) {
    %c0_i32 = arith.constant 0 : i32
    %c0_i32_0 = arith.constant 0 : i32
    return %arg0, %arg2, %c0_i32 : i32, i32, i32
  }
  func.func @transform_2(%arg0: i32, %arg1: i32, %arg2: i32) -> (i32, i32, i32) {
    %c0_i32 = arith.constant 0 : i32
    %c0_i32_0 = arith.constant 0 : i32
    return %arg0, %arg2, %c0_i32 : i32, i32, i32
  }
  func.func @transform_3(%arg0: i32, %arg1: i32, %arg2: i32) -> (i32, i32, i32) {
    %c0_i32 = arith.constant 0 : i32
    %c0_i32_0 = arith.constant 0 : i32
    return %arg0, %arg1, %c0_i32 : i32, i32, i32
  }
}

module attributes {stable_mosaic.version = 11 : i64} {
  func.func @_matmul_kernel(%arg0: i32, %arg1: i32, %arg2: i32, %arg3: memref<32x32xbf16, #tpu.memory_space<vmem>>, %arg4: memref<32x128xbf16, #tpu.memory_space<vmem>>, %arg5: memref<1x128xf32, #tpu.memory_space<vmem>>, %arg6: memref<32x128xbf16, #tpu.memory_space<vmem>>, %arg7: memref<32x128xf32, #tpu.memory_space<vmem>>) attributes {dimension_semantics = [#tpu.dimension_semantics<parallel>, #tpu.dimension_semantics<parallel>, #tpu.dimension_semantics<arbitrary>], iteration_bounds = array<i64: 1, 1, 1>, scalar_prefetch = 0 : i64, scratch_operands = 1 : i64, tpu.core_type = #tpu.core_type<tc>, window_params = [{transform_indices = @transform_0, window_bounds = array<i64: 32, 32>}, {transform_indices = @transform_1, window_bounds = array<i64: 32, 128>}, {transform_indices = @transform_2, window_bounds = array<i64: 1, 128>}, {transform_indices = @transform_3, window_bounds = array<i64: 32, 128>}]} {
    %c0_i32 = arith.constant 0 : i32
    %0 = arith.cmpi eq, %arg2, %c0_i32 : i32
    %1 = arith.extui %0 : i1 to i32
    %c0_i32_0 = arith.constant 0 : i32
    %2 = arith.cmpi ne, %1, %c0_i32_0 : i32
    scf.if %2 {
      %cst_10 = arith.constant 0.000000e+00 : f32
      %12 = vector.broadcast %cst_10 : f32 to vector<32x128xf32>
      %c0_11 = arith.constant 0 : index
      %c0_12 = arith.constant 0 : index
      %13 = vector.load %arg7[%c0_11, %c0_12] : memref<32x128xf32, #tpu.memory_space<vmem>>, vector<32x128xf32>
      tpu.vector_store %arg7[%c0_11, %c0_12], %12 {strides = array<i32>} : memref<32x128xf32, #tpu.memory_space<vmem>>, vector<32x128xf32>,
    } else {
    }
    %c0 = arith.constant 0 : index
    %c0_1 = arith.constant 0 : index
    %3 = vector.load %arg7[%c0, %c0_1] : memref<32x128xf32, #tpu.memory_space<vmem>>, vector<32x128xf32>
    %c0_2 = arith.constant 0 : index
    %c0_3 = arith.constant 0 : index
    %4 = vector.load %arg3[%c0_2, %c0_3] : memref<32x32xbf16, #tpu.memory_space<vmem>>, vector<32x32xbf16>
    %c0_4 = arith.constant 0 : index
    %c0_5 = arith.constant 0 : index
    %5 = vector.load %arg4[%c0_4, %c0_5] : memref<32x128xbf16, #tpu.memory_space<vmem>>, vector<32x128xbf16>
    %cst = arith.constant dense<0.000000e+00> : vector<32x128xf32>
    %6 = tpu.matmul %4, %5, %cst {dimension_numbers = #tpu.dot_dimension_numbers<[1], [0], [0], [1], [0, 0, 1, 1], [], []>} : vector<32x32xbf16>, vector<32x128xbf16>, vector<32x128xf32> -> vector<32x128xf32>
    %7 = arith.addf %3, %6 : vector<32x128xf32>
    %c0_6 = arith.constant 0 : index
    %c0_7 = arith.constant 0 : index
    %8 = vector.load %arg7[%c0_6, %c0_7] : memref<32x128xf32, #tpu.memory_space<vmem>>, vector<32x128xf32>
    tpu.vector_store %arg7[%c0_6, %c0_7], %7 {strides = array<i32>} : memref<32x128xf32, #tpu.memory_space<vmem>>, vector<32x128xf32>,
    %c0_i32_8 = arith.constant 0 : i32
    %9 = arith.cmpi eq, %arg2, %c0_i32_8 : i32
    %10 = arith.extui %9 : i1 to i32
    %c0_i32_9 = arith.constant 0 : i32
    %11 = arith.cmpi ne, %10, %c0_i32_9 : i32
    scf.if %11 {
      %c0_10 = arith.constant 0 : index
      %c0_11 = arith.constant 0 : index
      %12 = vector.load %arg7[%c0_10, %c0_11] : memref<32x128xf32, #tpu.memory_space<vmem>>, vector<32x128xf32>
      %c0_12 = arith.constant 0 : index
      %c0_13 = arith.constant 0 : index
      %13 = vector.load %arg5[%c0_12, %c0_13] : memref<1x128xf32, #tpu.memory_space<vmem>>, vector<1x128xf32>
      %14 = vector.broadcast %13 : vector<1x128xf32> to vector<32x128xf32>
      %15 = arith.addf %12, %14 : vector<32x128xf32>
      %16 = arith.truncf %15 : vector<32x128xf32> to vector<32x128xbf16>
      %c0_14 = arith.constant 0 : index
      %c0_15 = arith.constant 0 : index
      %17 = vector.load %arg6[%c0_14, %c0_15] : memref<32x128xbf16, #tpu.memory_space<vmem>>, vector<32x128xbf16>
      tpu.vector_store %arg6[%c0_14, %c0_15], %16 {strides = array<i32>} : memref<32x128xbf16, #tpu.memory_space<vmem>>, vector<32x128xbf16>,
    } else {
    }
    return
  }
  func.func @transform_0(%arg0: i32, %arg1: i32, %arg2: i32) -> (i32, i32) {
    %c0_i32 = arith.constant 0 : i32
    return %arg0, %arg2 : i32, i32
  }
  func.func @transform_1(%arg0: i32, %arg1: i32, %arg2: i32) -> (i32, i32) {
    %c0_i32 = arith.constant 0 : i32
    return %arg2, %arg1 : i32, i32
  }
  func.func @transform_2(%arg0: i32, %arg1: i32, %arg2: i32) -> (i32, i32) {
    %c0_i32 = arith.constant 0 : i32
    %c0_i32_0 = arith.constant 0 : i32
    return %c0_i32, %arg1 : i32, i32
  }
  func.func @transform_3(%arg0: i32, %arg1: i32, %arg2: i32) -> (i32, i32) {
    %c0_i32 = arith.constant 0 : i32
    return %arg0, %arg1 : i32, i32
  }
}

module attributes {stable_mosaic.version = 11 : i64} {
  func.func @_dwconv_gelu_kernel(%arg0: i32, %arg1: i32, %arg2: memref<1x4x4x128xbf16, #tpu.memory_space<vmem>>, %arg3: memref<3x3x128xf32, #tpu.memory_space<vmem>>, %arg4: memref<1x1x128xf32, #tpu.memory_space<vmem>>, %arg5: memref<1x4x4x128xbf16, #tpu.memory_space<vmem>>, %arg6: memref<6x6x128xf32, #tpu.memory_space<vmem>>) attributes {dimension_semantics = [#tpu.dimension_semantics<parallel>, #tpu.dimension_semantics<parallel>], iteration_bounds = array<i64: 2, 1>, scalar_prefetch = 0 : i64, scratch_operands = 1 : i64, tpu.core_type = #tpu.core_type<tc>, window_params = [{transform_indices = @transform_0, window_bounds = array<i64: 1, 4, 4, 128>}, {transform_indices = @transform_1, window_bounds = array<i64: 3, 3, 128>}, {transform_indices = @transform_2, window_bounds = array<i64: 1, 1, 128>}, {transform_indices = @transform_3, window_bounds = array<i64: 1, 4, 4, 128>}]} {
    %cst = arith.constant 0.000000e+00 : f32
    %0 = vector.broadcast %cst : f32 to vector<1x6x128xf32>
    %c0 = arith.constant 0 : index
    %c0_0 = arith.constant 0 : index
    %c0_1 = arith.constant 0 : index
    %1 = vector.load %arg6[%c0, %c0_0, %c0_1] : memref<6x6x128xf32, #tpu.memory_space<vmem>>, vector<1x6x128xf32>
    tpu.vector_store %arg6[%c0, %c0_0, %c0_1], %0 {strides = array<i32>} : memref<6x6x128xf32, #tpu.memory_space<vmem>>, vector<1x6x128xf32>,
    %cst_2 = arith.constant 0.000000e+00 : f32
    %2 = vector.broadcast %cst_2 : f32 to vector<1x6x128xf32>
    %c5 = arith.constant 5 : index
    %c0_3 = arith.constant 0 : index
    %c0_4 = arith.constant 0 : index
    %3 = vector.load %arg6[%c5, %c0_3, %c0_4] : memref<6x6x128xf32, #tpu.memory_space<vmem>>, vector<1x6x128xf32>
    tpu.vector_store %arg6[%c5, %c0_3, %c0_4], %2 {strides = array<i32>} : memref<6x6x128xf32, #tpu.memory_space<vmem>>, vector<1x6x128xf32>,
    %cst_5 = arith.constant 0.000000e+00 : f32
    %4 = vector.broadcast %cst_5 : f32 to vector<6x1x128xf32>
    %c0_6 = arith.constant 0 : index
    %c0_7 = arith.constant 0 : index
    %c0_8 = arith.constant 0 : index
    %5 = vector.load %arg6[%c0_6, %c0_7, %c0_8] : memref<6x6x128xf32, #tpu.memory_space<vmem>>, vector<6x1x128xf32>
    tpu.vector_store %arg6[%c0_6, %c0_7, %c0_8], %4 {strides = array<i32>} : memref<6x6x128xf32, #tpu.memory_space<vmem>>, vector<6x1x128xf32>,
    %cst_9 = arith.constant 0.000000e+00 : f32
    %6 = vector.broadcast %cst_9 : f32 to vector<6x1x128xf32>
    %c0_10 = arith.constant 0 : index
    %c5_11 = arith.constant 5 : index
    %c0_12 = arith.constant 0 : index
    %7 = vector.load %arg6[%c0_10, %c5_11, %c0_12] : memref<6x6x128xf32, #tpu.memory_space<vmem>>, vector<6x1x128xf32>
    tpu.vector_store %arg6[%c0_10, %c5_11, %c0_12], %6 {strides = array<i32>} : memref<6x6x128xf32, #tpu.memory_space<vmem>>, vector<6x1x128xf32>,
    %c0_13 = arith.constant 0 : index
    %c0_14 = arith.constant 0 : index
    %c0_15 = arith.constant 0 : index
    %c0_16 = arith.constant 0 : index
    %8 = vector.load %arg2[%c0_13, %c0_14, %c0_15, %c0_16] : memref<1x4x4x128xbf16, #tpu.memory_space<vmem>>, vector<1x4x4x128xbf16>
    %9 = vector.shape_cast %8 : vector<1x4x4x128xbf16> to vector<4x4x128xbf16>
    %10 = arith.extf %9 : vector<4x4x128xbf16> to vector<4x4x128xf32>
    %c1 = arith.constant 1 : index
    %c1_17 = arith.constant 1 : index
    %c0_18 = arith.constant 0 : index
    %11 = vector.load %arg6[%c1, %c1_17, %c0_18] : memref<6x6x128xf32, #tpu.memory_space<vmem>>, vector<4x4x128xf32>
    tpu.vector_store %arg6[%c1, %c1_17, %c0_18], %10 {strides = array<i32>} : memref<6x6x128xf32, #tpu.memory_space<vmem>>, vector<4x4x128xf32>,
    %c0_19 = arith.constant 0 : index
    %c0_20 = arith.constant 0 : index
    %c0_21 = arith.constant 0 : index
    %12 = vector.load %arg3[%c0_19, %c0_20, %c0_21] : memref<3x3x128xf32, #tpu.memory_space<vmem>>, vector<3x3x128xf32>
    %cst_22 = arith.constant 0.000000e+00 : f32
    %13 = vector.broadcast %cst_22 : f32 to vector<4x4x128xf32>
    %c0_23 = arith.constant 0 : index
    %c0_24 = arith.constant 0 : index
    %c0_25 = arith.constant 0 : index
    %14 = vector.load %arg6[%c0_23, %c0_24, %c0_25] : memref<6x6x128xf32, #tpu.memory_space<vmem>>, vector<4x4x128xf32>
    %15 = vector.extract_strided_slice %12 {offsets = [0, 0, 0], sizes = [1, 1, 128], strides = [1, 1, 1]} : vector<3x3x128xf32> to vector<1x1x128xf32>
    %16 = vector.shape_cast %15 : vector<1x1x128xf32> to vector<128xf32>
    %17 = vector.shape_cast %16 : vector<128xf32> to vector<1x1x128xf32>
    %18 = vector.broadcast %17 : vector<1x1x128xf32> to vector<4x4x128xf32>
    %19 = arith.mulf %14, %18 : vector<4x4x128xf32>
    %20 = arith.addf %13, %19 : vector<4x4x128xf32>
    %c0_26 = arith.constant 0 : index
    %c1_27 = arith.constant 1 : index
    %c0_28 = arith.constant 0 : index
    %21 = vector.load %arg6[%c0_26, %c1_27, %c0_28] : memref<6x6x128xf32, #tpu.memory_space<vmem>>, vector<4x4x128xf32>
    %22 = vector.extract_strided_slice %12 {offsets = [0, 1, 0], sizes = [1, 1, 128], strides = [1, 1, 1]} : vector<3x3x128xf32> to vector<1x1x128xf32>
    %23 = vector.shape_cast %22 : vector<1x1x128xf32> to vector<128xf32>
    %24 = vector.shape_cast %23 : vector<128xf32> to vector<1x1x128xf32>
    %25 = vector.broadcast %24 : vector<1x1x128xf32> to vector<4x4x128xf32>
    %26 = arith.mulf %21, %25 : vector<4x4x128xf32>
    %27 = arith.addf %20, %26 : vector<4x4x128xf32>
    %c0_29 = arith.constant 0 : index
    %c2 = arith.constant 2 : index
    %c0_30 = arith.constant 0 : index
    %28 = vector.load %arg6[%c0_29, %c2, %c0_30] : memref<6x6x128xf32, #tpu.memory_space<vmem>>, vector<4x4x128xf32>
    %29 = vector.extract_strided_slice %12 {offsets = [0, 2, 0], sizes = [1, 1, 128], strides = [1, 1, 1]} : vector<3x3x128xf32> to vector<1x1x128xf32>
    %30 = vector.shape_cast %29 : vector<1x1x128xf32> to vector<128xf32>
    %31 = vector.shape_cast %30 : vector<128xf32> to vector<1x1x128xf32>
    %32 = vector.broadcast %31 : vector<1x1x128xf32> to vector<4x4x128xf32>
    %33 = arith.mulf %28, %32 : vector<4x4x128xf32>
    %34 = arith.addf %27, %33 : vector<4x4x128xf32>
    %c1_31 = arith.constant 1 : index
    %c0_32 = arith.constant 0 : index
    %c0_33 = arith.constant 0 : index
    %35 = vector.load %arg6[%c1_31, %c0_32, %c0_33] : memref<6x6x128xf32, #tpu.memory_space<vmem>>, vector<4x4x128xf32>
    %36 = vector.extract_strided_slice %12 {offsets = [1, 0, 0], sizes = [1, 1, 128], strides = [1, 1, 1]} : vector<3x3x128xf32> to vector<1x1x128xf32>
    %37 = vector.shape_cast %36 : vector<1x1x128xf32> to vector<128xf32>
    %38 = vector.shape_cast %37 : vector<128xf32> to vector<1x1x128xf32>
    %39 = vector.broadcast %38 : vector<1x1x128xf32> to vector<4x4x128xf32>
    %40 = arith.mulf %35, %39 : vector<4x4x128xf32>
    %41 = arith.addf %34, %40 : vector<4x4x128xf32>
    %c1_34 = arith.constant 1 : index
    %c1_35 = arith.constant 1 : index
    %c0_36 = arith.constant 0 : index
    %42 = vector.load %arg6[%c1_34, %c1_35, %c0_36] : memref<6x6x128xf32, #tpu.memory_space<vmem>>, vector<4x4x128xf32>
    %43 = vector.extract_strided_slice %12 {offsets = [1, 1, 0], sizes = [1, 1, 128], strides = [1, 1, 1]} : vector<3x3x128xf32> to vector<1x1x128xf32>
    %44 = vector.shape_cast %43 : vector<1x1x128xf32> to vector<128xf32>
    %45 = vector.shape_cast %44 : vector<128xf32> to vector<1x1x128xf32>
    %46 = vector.broadcast %45 : vector<1x1x128xf32> to vector<4x4x128xf32>
    %47 = arith.mulf %42, %46 : vector<4x4x128xf32>
    %48 = arith.addf %41, %47 : vector<4x4x128xf32>
    %c1_37 = arith.constant 1 : index
    %c2_38 = arith.constant 2 : index
    %c0_39 = arith.constant 0 : index
    %49 = vector.load %arg6[%c1_37, %c2_38, %c0_39] : memref<6x6x128xf32, #tpu.memory_space<vmem>>, vector<4x4x128xf32>
    %50 = vector.extract_strided_slice %12 {offsets = [1, 2, 0], sizes = [1, 1, 128], strides = [1, 1, 1]} : vector<3x3x128xf32> to vector<1x1x128xf32>
    %51 = vector.shape_cast %50 : vector<1x1x128xf32> to vector<128xf32>
    %52 = vector.shape_cast %51 : vector<128xf32> to vector<1x1x128xf32>
    %53 = vector.broadcast %52 : vector<1x1x128xf32> to vector<4x4x128xf32>
    %54 = arith.mulf %49, %53 : vector<4x4x128xf32>
    %55 = arith.addf %48, %54 : vector<4x4x128xf32>
    %c2_40 = arith.constant 2 : index
    %c0_41 = arith.constant 0 : index
    %c0_42 = arith.constant 0 : index
    %56 = vector.load %arg6[%c2_40, %c0_41, %c0_42] : memref<6x6x128xf32, #tpu.memory_space<vmem>>, vector<4x4x128xf32>
    %57 = vector.extract_strided_slice %12 {offsets = [2, 0, 0], sizes = [1, 1, 128], strides = [1, 1, 1]} : vector<3x3x128xf32> to vector<1x1x128xf32>
    %58 = vector.shape_cast %57 : vector<1x1x128xf32> to vector<128xf32>
    %59 = vector.shape_cast %58 : vector<128xf32> to vector<1x1x128xf32>
    %60 = vector.broadcast %59 : vector<1x1x128xf32> to vector<4x4x128xf32>
    %61 = arith.mulf %56, %60 : vector<4x4x128xf32>
    %62 = arith.addf %55, %61 : vector<4x4x128xf32>
    %c2_43 = arith.constant 2 : index
    %c1_44 = arith.constant 1 : index
    %c0_45 = arith.constant 0 : index
    %63 = vector.load %arg6[%c2_43, %c1_44, %c0_45] : memref<6x6x128xf32, #tpu.memory_space<vmem>>, vector<4x4x128xf32>
    %64 = vector.extract_strided_slice %12 {offsets = [2, 1, 0], sizes = [1, 1, 128], strides = [1, 1, 1]} : vector<3x3x128xf32> to vector<1x1x128xf32>
    %65 = vector.shape_cast %64 : vector<1x1x128xf32> to vector<128xf32>
    %66 = vector.shape_cast %65 : vector<128xf32> to vector<1x1x128xf32>
    %67 = vector.broadcast %66 : vector<1x1x128xf32> to vector<4x4x128xf32>
    %68 = arith.mulf %63, %67 : vector<4x4x128xf32>
    %69 = arith.addf %62, %68 : vector<4x4x128xf32>
    %c2_46 = arith.constant 2 : index
    %c2_47 = arith.constant 2 : index
    %c0_48 = arith.constant 0 : index
    %70 = vector.load %arg6[%c2_46, %c2_47, %c0_48] : memref<6x6x128xf32, #tpu.memory_space<vmem>>, vector<4x4x128xf32>
    %71 = vector.extract_strided_slice %12 {offsets = [2, 2, 0], sizes = [1, 1, 128], strides = [1, 1, 1]} : vector<3x3x128xf32> to vector<1x1x128xf32>
    %72 = vector.shape_cast %71 : vector<1x1x128xf32> to vector<128xf32>
    %73 = vector.shape_cast %72 : vector<128xf32> to vector<1x1x128xf32>
    %74 = vector.broadcast %73 : vector<1x1x128xf32> to vector<4x4x128xf32>
    %75 = arith.mulf %70, %74 : vector<4x4x128xf32>
    %76 = arith.addf %69, %75 : vector<4x4x128xf32>
    %c0_49 = arith.constant 0 : index
    %c0_50 = arith.constant 0 : index
    %c0_51 = arith.constant 0 : index
    %77 = vector.load %arg4[%c0_49, %c0_50, %c0_51] : memref<1x1x128xf32, #tpu.memory_space<vmem>>, vector<1x1x128xf32>
    %78 = vector.broadcast %77 : vector<1x1x128xf32> to vector<4x4x128xf32>
    %79 = arith.addf %76, %78 : vector<4x4x128xf32>
    %cst_52 = arith.constant 5.000000e-01 : f32
    %80 = vector.broadcast %cst_52 : f32 to vector<4x4x128xf32>
    %81 = arith.mulf %80, %79 : vector<4x4x128xf32>
    %cst_53 = arith.constant 4.471500e-02 : f32
    %82 = vector.broadcast %cst_53 : f32 to vector<4x4x128xf32>
    %83 = arith.mulf %82, %79 : vector<4x4x128xf32>
    %84 = arith.mulf %83, %79 : vector<4x4x128xf32>
    %85 = arith.mulf %84, %79 : vector<4x4x128xf32>
    %86 = arith.addf %79, %85 : vector<4x4x128xf32>
    %cst_54 = arith.constant 0.797884583 : f32
    %87 = vector.broadcast %cst_54 : f32 to vector<4x4x128xf32>
    %88 = arith.mulf %87, %86 : vector<4x4x128xf32>
    %89 = math.tanh %88 : vector<4x4x128xf32>
    %cst_55 = arith.constant 1.000000e+00 : f32
    %90 = vector.broadcast %cst_55 : f32 to vector<4x4x128xf32>
    %91 = arith.addf %90, %89 : vector<4x4x128xf32>
    %92 = arith.mulf %81, %91 : vector<4x4x128xf32>
    %93 = arith.truncf %92 : vector<4x4x128xf32> to vector<4x4x128xbf16>
    %c0_56 = arith.constant 0 : index
    %c0_57 = arith.constant 0 : index
    %c0_58 = arith.constant 0 : index
    %c0_59 = arith.constant 0 : index
    %94 = vector.load %arg5[%c0_56, %c0_57, %c0_58, %c0_59] : memref<1x4x4x128xbf16, #tpu.memory_space<vmem>>, vector<1x4x4x128xbf16>
    %95 = vector.shape_cast %94 : vector<1x4x4x128xbf16> to vector<4x4x128xbf16>
    %96 = vector.shape_cast %93 : vector<4x4x128xbf16> to vector<1x4x4x128xbf16>
    tpu.vector_store %arg5[%c0_56, %c0_57, %c0_58, %c0_59], %96 {strides = array<i32>} : memref<1x4x4x128xbf16, #tpu.memory_space<vmem>>, vector<1x4x4x128xbf16>,
    return
  }
  func.func @transform_0(%arg0: i32, %arg1: i32) -> (i32, i32, i32, i32) {
    %c0_i32 = arith.constant 0 : i32
    %c0_i32_0 = arith.constant 0 : i32
    %c0_i32_1 = arith.constant 0 : i32
    return %arg0, %c0_i32, %c0_i32_0, %arg1 : i32, i32, i32, i32
  }
  func.func @transform_1(%arg0: i32, %arg1: i32) -> (i32, i32, i32) {
    %c0_i32 = arith.constant 0 : i32
    %c0_i32_0 = arith.constant 0 : i32
    %c0_i32_1 = arith.constant 0 : i32
    return %c0_i32, %c0_i32_0, %arg1 : i32, i32, i32
  }
  func.func @transform_2(%arg0: i32, %arg1: i32) -> (i32, i32, i32) {
    %c0_i32 = arith.constant 0 : i32
    %c0_i32_0 = arith.constant 0 : i32
    %c0_i32_1 = arith.constant 0 : i32
    return %c0_i32, %c0_i32_0, %arg1 : i32, i32, i32
  }
  func.func @transform_3(%arg0: i32, %arg1: i32) -> (i32, i32, i32, i32) {
    %c0_i32 = arith.constant 0 : i32
    %c0_i32_0 = arith.constant 0 : i32
    %c0_i32_1 = arith.constant 0 : i32
    return %arg0, %c0_i32, %c0_i32_0, %arg1 : i32, i32, i32, i32
  }
}

module attributes {stable_mosaic.version = 11 : i64} {
  func.func @_matmul_kernel(%arg0: i32, %arg1: i32, %arg2: i32, %arg3: memref<32x128xbf16, #tpu.memory_space<vmem>>, %arg4: memref<128x32xbf16, #tpu.memory_space<vmem>>, %arg5: memref<1x32xf32, #tpu.memory_space<vmem>>, %arg6: memref<32x32xbf16, #tpu.memory_space<vmem>>, %arg7: memref<1x32xf32, #tpu.memory_space<vmem>>, %arg8: memref<1x32xf32, #tpu.memory_space<vmem>>, %arg9: memref<32x32xbf16, #tpu.memory_space<vmem>>, %arg10: memref<32x32xf32, #tpu.memory_space<vmem>>) attributes {dimension_semantics = [#tpu.dimension_semantics<parallel>, #tpu.dimension_semantics<parallel>, #tpu.dimension_semantics<arbitrary>], iteration_bounds = array<i64: 1, 1, 1>, scalar_prefetch = 0 : i64, scratch_operands = 1 : i64, tpu.core_type = #tpu.core_type<tc>, window_params = [{transform_indices = @transform_0, window_bounds = array<i64: 32, 128>}, {transform_indices = @transform_1, window_bounds = array<i64: 128, 32>}, {transform_indices = @transform_2, window_bounds = array<i64: 1, 32>}, {transform_indices = @transform_3, window_bounds = array<i64: 32, 32>}, {transform_indices = @transform_4, window_bounds = array<i64: 1, 32>}, {transform_indices = @transform_5, window_bounds = array<i64: 1, 32>}, {transform_indices = @transform_6, window_bounds = array<i64: 32, 32>}]} {
    %c0_i32 = arith.constant 0 : i32
    %0 = arith.cmpi eq, %arg2, %c0_i32 : i32
    %1 = arith.extui %0 : i1 to i32
    %c0_i32_0 = arith.constant 0 : i32
    %2 = arith.cmpi ne, %1, %c0_i32_0 : i32
    scf.if %2 {
      %cst_10 = arith.constant 0.000000e+00 : f32
      %12 = vector.broadcast %cst_10 : f32 to vector<32x32xf32>
      %c0_11 = arith.constant 0 : index
      %c0_12 = arith.constant 0 : index
      %13 = vector.load %arg10[%c0_11, %c0_12] : memref<32x32xf32, #tpu.memory_space<vmem>>, vector<32x32xf32>
      tpu.vector_store %arg10[%c0_11, %c0_12], %12 {strides = array<i32>} : memref<32x32xf32, #tpu.memory_space<vmem>>, vector<32x32xf32>,
    } else {
    }
    %c0 = arith.constant 0 : index
    %c0_1 = arith.constant 0 : index
    %3 = vector.load %arg10[%c0, %c0_1] : memref<32x32xf32, #tpu.memory_space<vmem>>, vector<32x32xf32>
    %c0_2 = arith.constant 0 : index
    %c0_3 = arith.constant 0 : index
    %4 = vector.load %arg3[%c0_2, %c0_3] : memref<32x128xbf16, #tpu.memory_space<vmem>>, vector<32x128xbf16>
    %c0_4 = arith.constant 0 : index
    %c0_5 = arith.constant 0 : index
    %5 = vector.load %arg4[%c0_4, %c0_5] : memref<128x32xbf16, #tpu.memory_space<vmem>>, vector<128x32xbf16>
    %cst = arith.constant dense<0.000000e+00> : vector<32x32xf32>
    %6 = tpu.matmul %4, %5, %cst {dimension_numbers = #tpu.dot_dimension_numbers<[1], [0], [0], [1], [0, 0, 1, 1], [], []>} : vector<32x128xbf16>, vector<128x32xbf16>, vector<32x32xf32> -> vector<32x32xf32>
    %7 = arith.addf %3, %6 : vector<32x32xf32>
    %c0_6 = arith.constant 0 : index
    %c0_7 = arith.constant 0 : index
    %8 = vector.load %arg10[%c0_6, %c0_7] : memref<32x32xf32, #tpu.memory_space<vmem>>, vector<32x32xf32>
    tpu.vector_store %arg10[%c0_6, %c0_7], %7 {strides = array<i32>} : memref<32x32xf32, #tpu.memory_space<vmem>>, vector<32x32xf32>,
    %c0_i32_8 = arith.constant 0 : i32
    %9 = arith.cmpi eq, %arg2, %c0_i32_8 : i32
    %10 = arith.extui %9 : i1 to i32
    %c0_i32_9 = arith.constant 0 : i32
    %11 = arith.cmpi ne, %10, %c0_i32_9 : i32
    scf.if %11 {
      %c0_10 = arith.constant 0 : index
      %c0_11 = arith.constant 0 : index
      %12 = vector.load %arg10[%c0_10, %c0_11] : memref<32x32xf32, #tpu.memory_space<vmem>>, vector<32x32xf32>
      %c0_12 = arith.constant 0 : index
      %c0_13 = arith.constant 0 : index
      %13 = vector.load %arg5[%c0_12, %c0_13] : memref<1x32xf32, #tpu.memory_space<vmem>>, vector<1x32xf32>
      %14 = vector.broadcast %13 : vector<1x32xf32> to vector<32x32xf32>
      %15 = arith.addf %12, %14 : vector<32x32xf32>
      %c0_14 = arith.constant 0 : index
      %c0_15 = arith.constant 0 : index
      %16 = vector.load %arg6[%c0_14, %c0_15] : memref<32x32xbf16, #tpu.memory_space<vmem>>, vector<32x32xbf16>
      %17 = arith.extf %16 : vector<32x32xbf16> to vector<32x32xf32>
      %18 = arith.addf %15, %17 : vector<32x32xf32>
      %cst_16 = arith.constant dense<0.000000e+00> : vector<32xf32>
      %19 = vector.multi_reduction <add>, %18, %cst_16 [1] : vector<32x32xf32> to vector<32xf32>
      %20 = vector.shape_cast %19 : vector<32xf32> to vector<32x1xf32>
      %cst_17 = arith.constant 3.200000e+01 : f32
      %21 = vector.broadcast %cst_17 : f32 to vector<32x1xf32>
      %22 = arith.divf %20, %21 : vector<32x1xf32>
      %23 = vector.broadcast %22 : vector<32x1xf32> to vector<32x32xf32>
      %24 = arith.subf %18, %23 : vector<32x32xf32>
      %25 = arith.mulf %24, %24 : vector<32x32xf32>
      %cst_18 = arith.constant dense<0.000000e+00> : vector<32xf32>
      %26 = vector.multi_reduction <add>, %25, %cst_18 [1] : vector<32x32xf32> to vector<32xf32>
      %27 = vector.shape_cast %26 : vector<32xf32> to vector<32x1xf32>
      %cst_19 = arith.constant 3.200000e+01 : f32
      %28 = vector.broadcast %cst_19 : f32 to vector<32x1xf32>
      %29 = arith.divf %27, %28 : vector<32x1xf32>
      %cst_20 = arith.constant 9.99999974E-6 : f32
      %30 = vector.broadcast %cst_20 : f32 to vector<32x1xf32>
      %31 = arith.addf %29, %30 : vector<32x1xf32>
      %32 = math.rsqrt %31 : vector<32x1xf32>
      %33 = vector.broadcast %32 : vector<32x1xf32> to vector<32x32xf32>
      %34 = arith.mulf %24, %33 : vector<32x32xf32>
      %c0_21 = arith.constant 0 : index
      %c0_22 = arith.constant 0 : index
      %35 = vector.load %arg7[%c0_21, %c0_22] : memref<1x32xf32, #tpu.memory_space<vmem>>, vector<1x32xf32>
      %36 = vector.broadcast %35 : vector<1x32xf32> to vector<32x32xf32>
      %37 = arith.mulf %34, %36 : vector<32x32xf32>
      %c0_23 = arith.constant 0 : index
      %c0_24 = arith.constant 0 : index
      %38 = vector.load %arg8[%c0_23, %c0_24] : memref<1x32xf32, #tpu.memory_space<vmem>>, vector<1x32xf32>
      %39 = vector.broadcast %38 : vector<1x32xf32> to vector<32x32xf32>
      %40 = arith.addf %37, %39 : vector<32x32xf32>
      %41 = arith.truncf %40 : vector<32x32xf32> to vector<32x32xbf16>
      %c0_25 = arith.constant 0 : index
      %c0_26 = arith.constant 0 : index
      %42 = vector.load %arg9[%c0_25, %c0_26] : memref<32x32xbf16, #tpu.memory_space<vmem>>, vector<32x32xbf16>
      tpu.vector_store %arg9[%c0_25, %c0_26], %41 {strides = array<i32>} : memref<32x32xbf16, #tpu.memory_space<vmem>>, vector<32x32xbf16>,
    } else {
    }
    return
  }
  func.func @transform_0(%arg0: i32, %arg1: i32, %arg2: i32) -> (i32, i32) {
    %c0_i32 = arith.constant 0 : i32
    return %arg0, %arg2 : i32, i32
  }
  func.func @transform_1(%arg0: i32, %arg1: i32, %arg2: i32) -> (i32, i32) {
    %c0_i32 = arith.constant 0 : i32
    return %arg2, %arg1 : i32, i32
  }
  func.func @transform_2(%arg0: i32, %arg1: i32, %arg2: i32) -> (i32, i32) {
    %c0_i32 = arith.constant 0 : i32
    %c0_i32_0 = arith.constant 0 : i32
    return %c0_i32, %arg1 : i32, i32
  }
  func.func @transform_3(%arg0: i32, %arg1: i32, %arg2: i32) -> (i32, i32) {
    %c0_i32 = arith.constant 0 : i32
    return %arg0, %arg1 : i32, i32
  }
  func.func @transform_4(%arg0: i32, %arg1: i32, %arg2: i32) -> (i32, i32) {
    %c0_i32 = arith.constant 0 : i32
    %c0_i32_0 = arith.constant 0 : i32
    return %c0_i32, %arg1 : i32, i32
  }
  func.func @transform_5(%arg0: i32, %arg1: i32, %arg2: i32) -> (i32, i32) {
    %c0_i32 = arith.constant 0 : i32
    %c0_i32_0 = arith.constant 0 : i32
    return %c0_i32, %arg1 : i32, i32
  }
  func.func @transform_6(%arg0: i32, %arg1: i32, %arg2: i32) -> (i32, i32) {
    %c0_i32 = arith.constant 0 : i32
    return %arg0, %arg1 : i32, i32
  }
}

</mosaic_0001>

<bundles_post_ra>
// kernel: mix_transformer_encoder_layer.17
= control target key start
LH: loop header
LB: loop body
LE: loop exit
PB: predicated region body
PF: predicated region fallthrough
CT: control target
= control target key end

     0   :  { %vm163_vm0 = vcmask 1041408   ;;  %vm156_vm1 = vcmask 556032   ;;  %vm25_vm2 = vcmask 261120   ;;  %v463_v28 = vmov 0.0   ;;  %s614_s1 = inlined_call_operand.vmem [shape: bf16[196,32], index: 1, kind: input, shape index: {}]   ;;  %s615_s0 = inlined_call_operand.vmem [shape: bf16[32,196], index: 0, kind: input, shape index: {}]   ;;  %s616_s2 = inlined_call_operand.vmem [shape: f32[1,32], index: 2, kind: input, shape index: {}]   ;;  %s617_s3 = inlined_call_operand.vmem [shape: f32[1,32], index: 3, kind: input, shape index: {}]   ;;  %s618_s4 = inlined_call_operand.vmem [shape: f32[1,32], index: 4, kind: input, shape index: {}]   ;;  %s619_s5 = inlined_call_operand.vmem [shape: bf16[32,32], index: 5, kind: output, shape index: {}]  }
   0x1   :  { %v430_v0 = vld [vmem:[%s614_s1 + $0x38] sm:$0xff]  ;;  %v62_v1 = vld [vmem:[%s614_s1 + $0x60] sm:$0x3]  ;;  %v429_v3 = vld [vmem:[%s614_s1 + $0x30] sm:$0xff]  ;;  %26 = vst.msk [vmem:[#allocation2] sm:$0xff] %vm25_vm2, %v463_v28  ;;  %v464_v62 = vmov 32.0  }
   0x2   :  { %v130_v2 = vunpack.c.l.b16 %v62_v1  ;;  %167 = vmatpush.bf16.msra.mxu0 %v430_v0  ;;  %435 = vmatpush.bf16.msra.mxu2 %v430_v0  ;;  %v428_v6 = vld [vmem:[%s614_s1 + $0x28] sm:$0xff]  ;;  %v434_v7 = vld [vmem:[%s614_s1 + $0x58] sm:$0xff]  ;;  %v427_v8 = vld [vmem:[%s614_s1 + $0x20] sm:$0xff]  ;;  %27 = vst.msk [vmem:[#allocation2 + $0x8] sm:$0xff] %vm25_vm2, %v463_v28  ;;  %453 = vrcp.f32 %v464_v62  ;;  %vm344_vm10 = vcmask 257024  }
   0x3   :  { %v433_v9 = vld [vmem:[%s614_s1 + $0x50] sm:$0xff]  ;;  %v426_v10 = vld [vmem:[%s614_s1 + $0x18] sm:$0xff]  ;;  %v432_v11 = vld [vmem:[%s614_s1 + $0x48] sm:$0xff]  ;;  %28 = vst.msk [vmem:[#allocation2 + $0x10] sm:$0xff] %vm25_vm2, %v463_v28 }
   0x4   :  { %v143_v4 = vpack.c.b16 %v130_v2, %v130_v2  ;;  %v425_v12 = vld [vmem:[%s614_s1 + $0x10] sm:$0xff]  ;;  %v431_v13 = vld [vmem:[%s614_s1 + $0x40] sm:$0xff]  ;;  %v365_v15 = vld [vmem:[%s615_s0 + $0x18] sm:$0xf0]  ;;  %29 = vst.msk [vmem:[#allocation2 + $0x18] sm:$0xff] %vm25_vm2, %v463_v28 }
   0x5   :  { %v421_v14 = vld [vmem:[%s615_s0 + $0x14] sm:$0xf]  ;;  %v419_v16 = vld [vmem:[%s615_s0 + $0x4] sm:$0xf]  ;;  %v357_v17 = vld [vmem:[%s615_s0 + $0x8] sm:$0xf0] }
   0x6   :  { %v165_v5 = vsel %vm163_vm0, %v143_v4, 0  ;;  %168 = vmatpush.bf16.msra.mxu0 %v429_v3  ;;  %436 = vmatpush.bf16.msra.mxu2 %v429_v3  ;;  %v368_v18 = vor.u32 %v421_v14, %v365_v15  ;;  %v424_v19 = vld [vmem:[%s614_s1 + $0x8] sm:$0xff]  ;;  %v360_v20 = vor.u32 %v419_v16, %v357_v17  ;;  %v423_v21 = vld [vmem:[%s614_s1] sm:$0xff]  ;;  %v363_v24 = vld [vmem:[%s615_s0 + $0x10] sm:$0xf] }
   0x7   :  { %443 = vmatpush.bf16.msra.mxu3 %v165_v5  ;;  %189 = vmatpush.bf16.msra.mxu1 %v165_v5  ;;  %v355_v22 = vld [vmem:[%s615_s0] sm:$0xf]  ;;  %v420_v23 = vld [vmem:[%s615_s0 + $0x4] sm:$0xf0]  ;;  %v422_v25 = vld [vmem:[%s615_s0 + $0x14] sm:$0xf0] }
   0x8   :  { %v356_v26 = vor.u32 %v420_v23, %v355_v22  ;;  %v364_v27 = vor.u32 %v422_v25, %v363_v24  ;;  %v30_v30 = vld [vmem:[#allocation2] sm:$0xff]  ;;  %v454_v63 = vpop.eup %453 }
   0x9   :  { %v31_v39 = vld [vmem:[#allocation2 + $0x8] sm:$0xff]  ;;  %v450_v42 = vld [vmem:[%s616_s2] ss:$0 sm:$0xff]  ;;  %v242_v0 = vmul.f32 32.0, %v454_v63  ;;  %vm246_vm3 = vweird.f32 %v454_v63 }
   0xa   :  { %169 = vmatpush.bf16.msra.mxu0 %v428_v6  ;;  %437 = vmatpush.bf16.msra.mxu2 %v428_v6  ;;  %v32_v35 = vld [vmem:[#allocation2 + $0x10] sm:$0xff] }
   0xb   :  { %444 = vmatpush.bf16.msra.mxu3 %v434_v7  ;;  %190 = vmatpush.bf16.msra.mxu1 %v434_v7  ;;  %v33_v48 = vld [vmem:[#allocation2 + $0x18] sm:$0xff]  ;;  %v243_v1 = vsub.f32 1.0, %v242_v0 }
   0xd   :  { %v244_v2 = vmul.f32 %v454_v63, %v243_v1 }
   0xe   :  { %170 = vmatpush.bf16.msra.mxu0 %v427_v8  ;;  %438 = vmatpush.bf16.msra.mxu2 %v427_v8 }
   0xf   :  { %445 = vmatpush.bf16.msra.mxu3 %v433_v9  ;;  %191 = vmatpush.bf16.msra.mxu1 %v433_v9  ;;  %v245_v3 = vadd.f32 %v454_v63, %v244_v2 }
  0x11   :  { %v247_v4 = vsel %vm246_vm3, %v454_v63, %v245_v3 }
  0x12   :  { %171 = vmatpush.bf16.msra.mxu0 %v426_v10  ;;  %439 = vmatpush.bf16.msra.mxu2 %v426_v10 }
  0x13   :  { %446 = vmatpush.bf16.msra.mxu3 %v432_v11  ;;  %192 = vmatpush.bf16.msra.mxu1 %v432_v11 }
  0x16   :  { %172 = vmatpush.bf16.msra.mxu0 %v425_v12  ;;  %440 = vmatpush.bf16.msra.mxu2 %v425_v12 }
  0x17   :  { %447 = vmatpush.bf16.msra.mxu3 %v431_v13  ;;  %193 = vmatpush.bf16.msra.mxu1 %v431_v13 }
  0x1a   :  { %418 = vmatmul.msk.bf16.vlgmr.msra.gmra.mxu3 %vm156_vm1, %v368_v18  ;;  %173 = vmatpush.bf16.msra.mxu0 %v424_v19 }
  0x1b   :  { %441 = vmatpush.bf16.msra.mxu2 %v424_v19  ;;  %417 = vmatmul.msk.bf16.vlgmr.msra.gmra.mxu1 %vm156_vm1, %v360_v20 }
  0x1e   :  { %174 = vmatpush.bf16.msra.mxu0 %v423_v21 }
  0x1f   :  { %442 = vmatpush.bf16.msra.mxu2 %v423_v21 }
  0x21   :  { %175 = vmatmul.bf16.vlgmr.msra.gmra.mxu0 %v356_v26 }
  0x22   :  { %180 = vmatmul.bf16.vlgmr.msra.gmra.mxu2 %v364_v27 }
  0x98   :  { %v195_v29 = vpop.f32.mrf.mxu1 }
  0x9d   :  { %v200_v34 = vpop.f32.mrf.mxu3 }
  0x9e   :  { %v176_v31 = vpop.f32.mrf.mxu0 }
  0x9f   :  { %v196_v32 = vadd.f32 %v195_v29, %v176_v31 }
  0xa0   :  { %v197_v38 = vpop.f32.mrf.mxu1 }
  0xa1   :  { %v205_v33 = vadd.f32 %v196_v32, %v30_v30 }
  0xa3   :  { %210 = vst.msk [vmem:[#allocation2] sm:$0xff] %vm25_vm2, %v205_v33 }
  0xa5   :  { %v181_v36 = vpop.f32.mrf.mxu2  ;;  %v202_v47 = vpop.f32.mrf.mxu3 }
  0xa6   :  { %v201_v37 = vadd.f32 %v200_v34, %v181_v36  ;;  %v178_v40 = vpop.f32.mrf.mxu0 }
  0xa7   :  { %v198_v41 = vadd.f32 %v197_v38, %v178_v40 }
  0xa8   :  { %v207_v43 = vadd.f32 %v201_v37, %v32_v35 }
  0xa9   :  { %v206_v44 = vadd.f32 %v198_v41, %v31_v39 }
  0xaa   :  { %212 = vst.msk [vmem:[#allocation2 + $0x10] sm:$0xff] %vm25_vm2, %v207_v43  ;;  %v217_v45 = vld [vmem:[#allocation2] sm:$0xff] }
  0xab   :  { %211 = vst.msk [vmem:[#allocation2 + $0x8] sm:$0xff] %vm25_vm2, %v206_v44  ;;  %v225_v46 = vadd.f32 %v450_v42, %v217_v45 }
  0xad   :  { %v183_v49 = vpop.f32.mrf.mxu2  ;;  %v229_v50 = vsel %vm25_vm2, %v225_v46, 0.0 }
  0xae   :  { %v203_v51 = vadd.f32 %v202_v47, %v183_v49  ;;  %230 = vadd.xlane.f32.xlu0 %v229_v50  ;;  %v451_v47 = vld [vmem:[%s617_s3] ss:$0 sm:$0xff] }
  0xb0   :  { %v208_v52 = vadd.f32 %v203_v51, %v33_v48  ;;  %v452_v51 = vld [vmem:[%s618_s4] ss:$0 sm:$0xff] }
  0xb1   :  { %v219_v53 = vld [vmem:[#allocation2 + $0x10] sm:$0xff] }
  0xb2   :  { %213 = vst.msk [vmem:[#allocation2 + $0x18] sm:$0xff] %vm25_vm2, %v208_v52  ;;  %v227_v54 = vadd.f32 %v450_v42, %v219_v53  ;;  %v218_v55 = vld [vmem:[#allocation2 + $0x8] sm:$0xff] }
  0xb3   :  { %v226_v56 = vadd.f32 %v450_v42, %v218_v55 }
  0xb4   :  { %v235_v57 = vsel %vm25_vm2, %v227_v54, 0.0 }
  0xb5   :  { %236 = vadd.xlane.f32.xlu1 %v235_v57  ;;  %v232_v58 = vsel %vm25_vm2, %v226_v56, 0.0 }
  0xb6   :  { %233 = vadd.xlane.f32.xlu0 %v232_v58 }
  0xb9   :  { %v220_v59 = vld [vmem:[#allocation2 + $0x18] sm:$0xff] }
  0xba   :  { %v228_v60 = vadd.f32 %v450_v42, %v220_v59 }
  0xbc   :  { %v238_v61 = vsel %vm25_vm2, %v228_v60, 0.0 }
  0xbd   :  { %239 = vadd.xlane.f32.xlu1 %v238_v61 }
 0x121   :  { %v231_v5 = vpop.xlane.xlu0 %230 }
 0x122   :  { %v248_v6 = vmul.f32 %v247_v4, %v231_v5 }
 0x124   :  { %v252_v7 = vsub.f32 %v225_v46, %v248_v6 }
 0x126   :  { %v256_v8 = vmul.f32 %v252_v7, %v252_v7 }
 0x128   :  { %v237_v9 = vpop.xlane.xlu1 %236  ;;  %v260_v10 = vsel %vm25_vm2, %v256_v8, 0.0 }
 0x129   :  { %v250_v11 = vmul.f32 %v247_v4, %v237_v9  ;;  %261 = vadd.xlane.f32.xlu2 %v260_v10  ;;  %v234_v12 = vpop.xlane.xlu0 %233 }
 0x12a   :  { %v249_v13 = vmul.f32 %v247_v4, %v234_v12 }
 0x12b   :  { %v574_v14 = vsub.f32 %v227_v54, %v250_v11 }
 0x12c   :  { %v576_v15 = vsub.f32 %v226_v56, %v249_v13 }
 0x12d   :  { %v258_v16 = vmul.f32 %v574_v14, %v574_v14 }
 0x12e   :  { %v257_v17 = vmul.f32 %v576_v15, %v576_v15 }
 0x12f   :  { %v266_v18 = vsel %vm25_vm2, %v258_v16, 0.0 }
 0x130   :  { %v240_v19 = vpop.xlane.xlu1 %239  ;;  %267 = vadd.xlane.f32.xlu0 %v266_v18  ;;  %v263_v20 = vsel %vm25_vm2, %v257_v17, 0.0 }
 0x131   :  { %v251_v21 = vmul.f32 %v247_v4, %v240_v19  ;;  %264 = vadd.xlane.f32.xlu2 %v263_v20 }
 0x133   :  { %v584_v22 = vsub.f32 %v228_v60, %v251_v21 }
 0x135   :  { %v259_v23 = vmul.f32 %v584_v22, %v584_v22 }
 0x137   :  { %v269_v24 = vsel %vm25_vm2, %v259_v23, 0.0 }
 0x138   :  { %270 = vadd.xlane.f32.xlu1 %v269_v24 }
 0x19c   :  { %v262_v25 = vpop.xlane.xlu2 %261 }
 0x19d   :  { %v272_v26 = vmul.f32 %v262_v25, %v247_v4 }
 0x19f   :  { %v276_v27 = vadd.f32 1e-05, %v272_v26 }
 0x1a1   :  { %455 = vrsqrt.f32 %v276_v27  ;;  %vm286_vm5 = vweird.f32 %v276_v27 }
 0x1a3   :  { %v268_v28 = vpop.xlane.xlu0 %267 }
 0x1a4   :  { %v274_v29 = vmul.f32 %v268_v28, %v247_v4  ;;  %v265_v30 = vpop.xlane.xlu2 %264 }
 0x1a5   :  { %v273_v31 = vmul.f32 %v265_v30, %v247_v4 }
 0x1a6   :  { %v278_v32 = vadd.f32 1e-05, %v274_v29 }
 0x1a7   :  { %v456_v33 = vpop.eup %455  ;;  %v277_v34 = vadd.f32 1e-05, %v273_v31 }
 0x1a8   :  { %v281_v35 = vmul.f32 %v456_v33, %v276_v27  ;;  %457 = vrsqrt.f32 %v278_v32  ;;  %vm287_vm4 = vweird.f32 %v456_v33  ;;  %vm306_vm9 = vweird.f32 %v278_v32 }
 0x1a9   :  { %459 = vrsqrt.f32 %v277_v34  ;;  %vm288_vm6 = vmor %vm286_vm5, %vm287_vm4  ;;  %vm296_vm12 = vweird.f32 %v277_v34 }
 0x1aa   :  { %v282_v36 = vmul.f32 %v456_v33, %v281_v35 }
 0x1ab   :  { %v271_v37 = vpop.xlane.xlu1 %270 }
 0x1ac   :  { %v283_v38 = vmul.f32 0.5, %v282_v36  ;;  %v275_v39 = vmul.f32 %v271_v37, %v247_v4 }
 0x1ae   :  { %v458_v40 = vpop.eup %457  ;;  %v284_v41 = vsub.f32 1.5, %v283_v38  ;;  %v279_v42 = vadd.f32 1e-05, %v275_v39 }
 0x1af   :  { %v460_v43 = vpop.eup %459  ;;  %v301_v44 = vmul.f32 %v458_v40, %v278_v32  ;;  %vm307_vm7 = vweird.f32 %v458_v40 }
 0x1b0   :  { %v285_v45 = vmul.f32 %v456_v33, %v284_v41  ;;  %v291_v46 = vmul.f32 %v460_v43, %v277_v34  ;;  %461 = vrsqrt.f32 %v279_v42  ;;  %vm297_vm8 = vweird.f32 %v460_v43  ;;  %vm308_vm11 = vmor %vm306_vm9, %vm307_vm7 }
 0x1b1   :  { %v302_v48 = vmul.f32 %v458_v40, %v301_v44  ;;  %vm298_vm13 = vmor %vm296_vm12, %vm297_vm8  ;;  %vm316_vm15 = vweird.f32 %v279_v42 }
 0x1b2   :  { %v289_v49 = vsel %vm288_vm6, %v456_v33, %v285_v45  ;;  %v292_v50 = vmul.f32 %v460_v43, %v291_v46 }
 0x1b3   :  { %v320_v52 = vmul.f32 %v289_v49, %v252_v7  ;;  %v303_v53 = vmul.f32 0.5, %v302_v48 }
 0x1b4   :  { %v293_v54 = vmul.f32 0.5, %v292_v50 }
 0x1b5   :  { %v328_v55 = vmul.f32 %v451_v47, %v320_v52  ;;  %v304_v56 = vsub.f32 1.5, %v303_v53 }
 0x1b6   :  { %v462_v57 = vpop.eup %461  ;;  %v294_v58 = vsub.f32 1.5, %v293_v54 }
 0x1b7   :  { %v336_v59 = vadd.f32 %v452_v51, %v328_v55  ;;  %v305_v60 = vmul.f32 %v458_v40, %v304_v56  ;;  %v311_v61 = vmul.f32 %v462_v57, %v279_v42  ;;  %vm317_vm14 = vweird.f32 %v462_v57 }
 0x1b8   :  { %v295_v62 = vmul.f32 %v460_v43, %v294_v58  ;;  %vm318_vm0 = vmor %vm316_vm15, %vm317_vm14 }
 0x1b9   :  { %v340_v63 = vpack.c.bf16 %v336_v59, %v336_v59  ;;  %v309_v0 = vsel %vm308_vm11, %v458_v40, %v305_v60  ;;  %v312_v1 = vmul.f32 %v462_v57, %v311_v61 }
 0x1ba   :  { %v322_v2 = vmul.f32 %v309_v0, %v574_v14  ;;  %v299_v3 = vsel %vm298_vm13, %v460_v43, %v295_v62 }
 0x1bb   :  { %345 = vst.msk [vmem:[%s619_s5] sm:$0xf] %vm344_vm10, %v340_v63  ;;  %v321_v4 = vmul.f32 %v299_v3, %v576_v15  ;;  %v313_v5 = vmul.f32 0.5, %v312_v1 }
 0x1bc   :  { %v330_v6 = vmul.f32 %v451_v47, %v322_v2 }
 0x1bd   :  { %v329_v7 = vmul.f32 %v451_v47, %v321_v4  ;;  %v314_v8 = vsub.f32 1.5, %v313_v5 }
 0x1be   :  { %v338_v9 = vadd.f32 %v452_v51, %v330_v6 }
 0x1bf   :  { %v337_v10 = vadd.f32 %v452_v51, %v329_v7  ;;  %v315_v11 = vmul.f32 %v462_v57, %v314_v8 }
 0x1c0   :  { %v342_v12 = vpack.c.bf16 %v338_v9, %v338_v9 }
 0x1c1   :  { %v341_v13 = vpack.c.bf16 %v337_v10, %v337_v10  ;;  %v319_v14 = vsel %vm318_vm0, %v462_v57, %v315_v11 }
 0x1c2   :  { %347 = vst.msk [vmem:[%s619_s5 + $0x8] sm:$0xf] %vm344_vm10, %v342_v12  ;;  %v323_v15 = vmul.f32 %v319_v14, %v584_v22 }
 0x1c3   :  { %346 = vst.msk [vmem:[%s619_s5 + $0x4] sm:$0xf] %vm344_vm10, %v341_v13 }
 0x1c4   :  { %v331_v16 = vmul.f32 %v451_v47, %v323_v15 }
 0x1c6   :  { %v339_v17 = vadd.f32 %v452_v51, %v331_v16 }
 0x1c8   :  { %v343_v18 = vpack.c.bf16 %v339_v17, %v339_v17 }
 0x1ca   :  { %348 = vst.msk [vmem:[%s619_s5 + $0xc] sm:$0xf] %vm344_vm10, %v343_v18 }

// kernel: mix_transformer_encoder_layer.19
= control target key start
LH: loop header
LB: loop body
LE: loop exit
PB: predicated region body
PF: predicated region fallthrough
CT: control target
= control target key end

     0   :  { %vm24_vm0 = vcmask 261120   ;;  %v212_v2 = vmov 0.0   ;;  %v213_v18 = vmov 32.0   ;;  %vm157_vm5 = vcmask 257024   ;;  %s287_s1 = inlined_call_operand.vmem [shape: bf16[128,32], index: 1, kind: input, shape index: {}]   ;;  %s288_s0 = inlined_call_operand.vmem [shape: bf16[8,128], index: 0, kind: input, shape index: {}]   ;;  %s289_s2 = inlined_call_operand.vmem [shape: f32[1,32], index: 2, kind: input, shape index: {}]   ;;  %s290_s3 = inlined_call_operand.vmem [shape: f32[1,32], index: 3, kind: input, shape index: {}]   ;;  %s291_s4 = inlined_call_operand.vmem [shape: f32[1,32], index: 4, kind: input, shape index: {}]   ;;  %s292_s5 = inlined_call_operand.vmem [shape: bf16[8,32], index: 5, kind: output, shape index: {}]  }
   0x1   :  { %v202_v0 = vld [vmem:[%s287_s1 + $0x38] sm:$0xff]  ;;  %v201_v1 = vld [vmem:[%s287_s1 + $0x30] sm:$0xff]  ;;  %25 = vst.msk [vmem:[#allocation2] sm:$0xff] %vm24_vm0, %v212_v2  ;;  %v200_v3 = vld [vmem:[%s287_s1 + $0x28] sm:$0xff]  ;;  %208 = vrcp.f32 %v213_v18 }
   0x2   :  { %92 = vmatpush.bf16.msra.mxu0 %v202_v0  ;;  %v199_v4 = vld [vmem:[%s287_s1 + $0x20] sm:$0xff]  ;;  %v198_v5 = vld [vmem:[%s287_s1 + $0x18] sm:$0xff]  ;;  %v197_v6 = vld [vmem:[%s287_s1 + $0x10] sm:$0xff] }
   0x3   :  { %v196_v7 = vld [vmem:[%s287_s1 + $0x8] sm:$0xff]  ;;  %v195_v8 = vld [vmem:[%s287_s1] sm:$0xff] }
   0x4   :  { %v27_v9 = vld [vmem:[%s288_s0] sm:$0xf] }
   0x5   :  { %v205_v13 = vld [vmem:[%s289_s2] ss:$0 sm:$0xff] }
   0x6   :  { %93 = vmatpush.bf16.msra.mxu0 %v201_v1  ;;  %v206_v39 = vld [vmem:[%s290_s3] ss:$0 sm:$0xff] }
   0x7   :  { %v209_v19 = vpop.eup %208  ;;  %v207_v41 = vld [vmem:[%s291_s4] ss:$0 sm:$0xff] }
   0x8   :  { %v26_v10 = vld [vmem:[#allocation2] sm:$0xff]  ;;  %v121_v20 = vmul.f32 32.0, %v209_v19  ;;  %vm125_vm1 = vweird.f32 %v209_v19 }
   0xa   :  { %94 = vmatpush.bf16.msra.mxu0 %v200_v3  ;;  %v122_v21 = vsub.f32 1.0, %v121_v20 }
   0xc   :  { %v123_v22 = vmul.f32 %v209_v19, %v122_v21 }
   0xe   :  { %95 = vmatpush.bf16.msra.mxu0 %v199_v4  ;;  %v124_v23 = vadd.f32 %v209_v19, %v123_v22 }
  0x10   :  { %v126_v24 = vsel %vm125_vm1, %v209_v19, %v124_v23 }
  0x12   :  { %96 = vmatpush.bf16.msra.mxu0 %v198_v5 }
  0x16   :  { %97 = vmatpush.bf16.msra.mxu0 %v197_v6 }
  0x1a   :  { %98 = vmatpush.bf16.msra.mxu0 %v196_v7 }
  0x1e   :  { %99 = vmatpush.bf16.msra.mxu0 %v195_v8 }
  0x21   :  { %100 = vmatmul.bf16.vlgmr.msra.gmra.mxu0 %v27_v9 }
  0x9e   :  { %v101_v11 = vpop.f32.mrf.mxu0 }
  0x9f   :  { %v105_v12 = vadd.f32 %v101_v11, %v26_v10 }
  0xa1   :  { %107 = vst.msk [vmem:[#allocation2] sm:$0xff] %vm24_vm0, %v105_v12 }
  0xa6   :  { %v103_v14 = vpop.f32.mrf.mxu0 }
  0xa8   :  { %v111_v15 = vld [vmem:[#allocation2] sm:$0xff] }
  0xa9   :  { %v116_v16 = vadd.f32 %v205_v13, %v111_v15 }
  0xab   :  { %v117_v17 = vsel %vm24_vm0, %v116_v16, 0.0 }
  0xac   :  { %118 = vadd.xlane.f32.xlu0 %v117_v17 }
 0x11f   :  { %v119_v25 = vpop.xlane.xlu0 %118 }
 0x120   :  { %v127_v26 = vmul.f32 %v126_v24, %v119_v25 }
 0x122   :  { %v128_v27 = vsub.f32 %v116_v16, %v127_v26 }
 0x124   :  { %v129_v28 = vmul.f32 %v128_v27, %v128_v27 }
 0x126   :  { %v130_v29 = vsel %vm24_vm0, %v129_v28, 0.0 }
 0x127   :  { %131 = vadd.xlane.f32.xlu0 %v130_v29 }
 0x19a   :  { %v132_v30 = vpop.xlane.xlu0 %131 }
 0x19b   :  { %v133_v31 = vmul.f32 %v132_v30, %v126_v24 }
 0x19d   :  { %v134_v32 = vadd.f32 1e-05, %v133_v31 }
 0x19f   :  { %210 = vrsqrt.f32 %v134_v32  ;;  %vm141_vm3 = vweird.f32 %v134_v32 }
 0x1a5   :  { %v211_v33 = vpop.eup %210 }
 0x1a6   :  { %v136_v34 = vmul.f32 %v211_v33, %v134_v32  ;;  %vm142_vm2 = vweird.f32 %v211_v33 }
 0x1a7   :  { %vm143_vm4 = vmor %vm141_vm3, %vm142_vm2 }
 0x1a8   :  { %v137_v35 = vmul.f32 %v211_v33, %v136_v34 }
 0x1aa   :  { %v138_v36 = vmul.f32 0.5, %v137_v35 }
 0x1ac   :  { %v139_v37 = vsub.f32 1.5, %v138_v36 }
 0x1ae   :  { %v140_v38 = vmul.f32 %v211_v33, %v139_v37 }
 0x1b0   :  { %v144_v40 = vsel %vm143_vm4, %v211_v33, %v140_v38 }
 0x1b1   :  { %v145_v42 = vmul.f32 %v144_v40, %v128_v27 }
 0x1b3   :  { %v150_v43 = vmul.f32 %v206_v39, %v145_v42 }
 0x1b5   :  { %v155_v44 = vadd.f32 %v207_v41, %v150_v43 }
 0x1b7   :  { %v156_v45 = vpack.c.bf16 %v155_v44, %v155_v44 }
 0x1b9   :  { %158 = vst.msk [vmem:[%s292_s5] sm:$0xf] %vm157_vm5, %v156_v45 }

// kernel: mix_transformer_encoder_layer.20
= control target key start
LH: loop header
LB: loop body
LE: loop exit
PB: predicated region body
PF: predicated region fallthrough
CT: control target
= control target key end

     0   :  { %vm19_vm0 = vcmask 523264   ;;  %v88_v1 = vmov 0.0   ;;  %vm39_vm1 = vcmask 261120   ;;  %vm69_vm2 = vcmask 519168   ;;  %s124_s1 = inlined_call_operand.vmem [shape: bf16[32,64], index: 1, kind: input, shape index: {}]   ;;  %s125_s2 = inlined_call_operand.vmem [shape: f32[1,64], index: 2, kind: input, shape index: {}]   ;;  %s126_s0 = inlined_call_operand.vmem [shape: bf16[8,32], index: 0, kind: input, shape index: {}]   ;;  %s127_s3 = inlined_call_operand.vmem [shape: bf16[8,64], index: 3, kind: output, shape index: {}]  }
   0x1   :  { %v85_v0 = vld [vmem:[%s124_s1 + $0x8] sm:$0xff]  ;;  %20 = vst.msk [vmem:[#allocation2] sm:$0xff] %vm19_vm0, %v88_v1  ;;  %v84_v2 = vld [vmem:[%s124_s1] sm:$0xff] }
   0x2   :  { %49 = vmatpush.bf16.msra.mxu0 %v85_v0  ;;  %v22_v3 = vld [vmem:[%s126_s0] sm:$0xf] }
   0x3   :  { %v87_v7 = vld [vmem:[%s125_s2] ss:$0 sm:$0xff] }
   0x6   :  { %50 = vmatpush.bf16.msra.mxu0 %v84_v2 }
   0x8   :  { %v21_v4 = vld [vmem:[#allocation2] sm:$0xff] }
   0x9   :  { %83 = vmatmul.msk.bf16.vlgmr.msra.gmra.mxu0 %vm39_vm1, %v22_v3 }
  0x86   :  { %v52_v5 = vpop.f32.mrf.mxu0 }
  0x87   :  { %v56_v6 = vadd.f32 %v52_v5, %v21_v4 }
  0x89   :  { %58 = vst.msk [vmem:[#allocation2] sm:$0xff] %vm19_vm0, %v56_v6 }
  0x8e   :  { %v54_v8 = vpop.f32.mrf.mxu0 }
  0x90   :  { %v62_v9 = vld [vmem:[#allocation2] sm:$0xff] }
  0x91   :  { %v67_v10 = vadd.f32 %v87_v7, %v62_v9 }
  0x93   :  { %v68_v11 = vpack.c.bf16 %v67_v10, %v67_v10 }
  0x95   :  { %70 = vst.msk [vmem:[%s127_s3] sm:$0xf] %vm69_vm2, %v68_v11 }

// kernel: mix_transformer_encoder_layer.18
= control target key start
LH: loop header
LB: loop body
LE: loop exit
PB: predicated region body
PF: predicated region fallthrough
CT: control target
= control target key end

     0   :  { %vm19_vm0 = vcmask 261120   ;;  %v146_v1 = vmov 0.0   ;;  %vm111_vm1 = vcmask 257024   ;;  %s204_s1 = inlined_call_operand.vmem [shape: bf16[32,32], index: 1, kind: input, shape index: {}]   ;;  %s205_s2 = inlined_call_operand.vmem [shape: f32[1,32], index: 2, kind: input, shape index: {}]   ;;  %s206_s0 = inlined_call_operand.vmem [shape: bf16[32,32], index: 0, kind: input, shape index: {}]   ;;  %s207_s3 = inlined_call_operand.vmem [shape: bf16[32,32], index: 3, kind: output, shape index: {}]  }
   0x1   :  { %v141_v0 = vld [vmem:[%s204_s1 + $0x8] sm:$0xff]  ;;  %20 = vst.msk [vmem:[#allocation2] sm:$0xff] %vm19_vm0, %v146_v1  ;;  %v140_v2 = vld [vmem:[%s204_s1] sm:$0xff] }
   0x2   :  { %21 = vst.msk [vmem:[#allocation2 + $0x8] sm:$0xff] %vm19_vm0, %v146_v1  ;;  %71 = vmatpush.bf16.msra.mxu0 %v141_v0  ;;  %142 = vmatpush.bf16.msra.mxu1 %v141_v0  ;;  %v138_v3 = vld [vmem:[%s206_s0] sm:$0xff]  ;;  %v139_v4 = vld [vmem:[%s206_s0 + $0x8] sm:$0xff] }
   0x3   :  { %22 = vst.msk [vmem:[#allocation2 + $0x10] sm:$0xff] %vm19_vm0, %v146_v1  ;;  %v145_v13 = vld [vmem:[%s205_s2] ss:$0 sm:$0xff] }
   0x4   :  { %23 = vst.msk [vmem:[#allocation2 + $0x18] sm:$0xff] %vm19_vm0, %v146_v1 }
   0x6   :  { %72 = vmatpush.bf16.msra.mxu0 %v140_v2  ;;  %143 = vmatpush.bf16.msra.mxu1 %v140_v2 }
   0x8   :  { %v24_v5 = vld [vmem:[#allocation2] sm:$0xff] }
   0x9   :  { %136 = vmatmul.msk.bf16.vlgmr.msra.gmra.mxu0 %vm19_vm0, %v138_v3  ;;  %137 = vmatmul.msk.bf16.vlgmr.msra.gmra.mxu1 %vm19_vm0, %v139_v4  ;;  %v25_v11 = vld [vmem:[#allocation2 + $0x8] sm:$0xff] }
   0xa   :  { %v26_v6 = vld [vmem:[#allocation2 + $0x10] sm:$0xff] }
   0xb   :  { %v27_v12 = vld [vmem:[#allocation2 + $0x18] sm:$0xff] }
  0x86   :  { %v74_v7 = vpop.f32.mrf.mxu0  ;;  %v79_v8 = vpop.f32.mrf.mxu1 }
  0x87   :  { %v84_v9 = vadd.f32 %v74_v7, %v24_v5  ;;  %v86_v10 = vadd.f32 %v79_v8, %v26_v6 }
  0x89   :  { %88 = vst.msk [vmem:[#allocation2] sm:$0xff] %vm19_vm0, %v84_v9 }
  0x8a   :  { %90 = vst.msk [vmem:[#allocation2 + $0x10] sm:$0xff] %vm19_vm0, %v86_v10 }
  0x8e   :  { %v76_v14 = vpop.f32.mrf.mxu0  ;;  %v81_v15 = vpop.f32.mrf.mxu1 }
  0x8f   :  { %v85_v16 = vadd.f32 %v76_v14, %v25_v11  ;;  %v87_v17 = vadd.f32 %v81_v15, %v27_v12 }
  0x90   :  { %v95_v18 = vld [vmem:[#allocation2] sm:$0xff] }
  0x91   :  { %v103_v19 = vadd.f32 %v145_v13, %v95_v18  ;;  %v97_v20 = vld [vmem:[#allocation2 + $0x10] sm:$0xff]  ;;  %89 = vst.msk [vmem:[#allocation2 + $0x8] sm:$0xff] %vm19_vm0, %v85_v16 }
  0x92   :  { %v105_v21 = vadd.f32 %v145_v13, %v97_v20  ;;  %91 = vst.msk [vmem:[#allocation2 + $0x18] sm:$0xff] %vm19_vm0, %v87_v17 }
  0x93   :  { %v107_v22 = vpack.c.bf16 %v103_v19, %v103_v19 }
  0x94   :  { %v109_v23 = vpack.c.bf16 %v105_v21, %v105_v21 }
  0x95   :  { %112 = vst.msk [vmem:[%s207_s3] sm:$0xf] %vm111_vm1, %v107_v22 }
  0x96   :  { %114 = vst.msk [vmem:[%s207_s3 + $0x8] sm:$0xf] %vm111_vm1, %v109_v23 }
  0x98   :  { %v96_v24 = vld [vmem:[#allocation2 + $0x8] sm:$0xff] }
  0x99   :  { %v104_v25 = vadd.f32 %v145_v13, %v96_v24  ;;  %v98_v26 = vld [vmem:[#allocation2 + $0x18] sm:$0xff] }
  0x9a   :  { %v106_v27 = vadd.f32 %v145_v13, %v98_v26 }
  0x9b   :  { %v108_v28 = vpack.c.bf16 %v104_v25, %v104_v25 }
  0x9c   :  { %v110_v29 = vpack.c.bf16 %v106_v27, %v106_v27 }
  0x9d   :  { %113 = vst.msk [vmem:[%s207_s3 + $0x4] sm:$0xf] %vm111_vm1, %v108_v28 }
  0x9e   :  { %115 = vst.msk [vmem:[%s207_s3 + $0xc] sm:$0xf] %vm111_vm1, %v110_v29 }

// kernel: mix_transformer_encoder_layer.22
= control target key start
LH: loop header
LB: loop body
LE: loop exit
PB: predicated region body
PF: predicated region fallthrough
CT: control target
= control target key end

     0   :  { %vm22_vm0 = vcmask 261120   ;;  %v170_v1 = vmov 0.0   ;;  %vm126_vm1 = vcmask 257024   ;;  %s243_s1 = inlined_call_operand.vmem [shape: bf16[32,32], index: 1, kind: input, shape index: {}]   ;;  %s244_s2 = inlined_call_operand.vmem [shape: f32[1,32], index: 2, kind: input, shape index: {}]   ;;  %s245_s0 = inlined_call_operand.vmem [shape: bf16[32,32], index: 0, kind: input, shape index: {}]   ;;  %s246_s3 = inlined_call_operand.vmem [shape: bf16[32,32], index: 3, kind: input, shape index: {}]   ;;  %s247_s4 = inlined_call_operand.vmem [shape: bf16[32,32], index: 4, kind: output, shape index: {}]  }
   0x1   :  { %v156_v0 = vld [vmem:[%s243_s1 + $0x8] sm:$0xff]  ;;  %23 = vst.msk [vmem:[#allocation2] sm:$0xff] %vm22_vm0, %v170_v1  ;;  %v155_v2 = vld [vmem:[%s243_s1] sm:$0xff] }
   0x2   :  { %24 = vst.msk [vmem:[#allocation2 + $0x8] sm:$0xff] %vm22_vm0, %v170_v1  ;;  %74 = vmatpush.bf16.msra.mxu0 %v156_v0  ;;  %166 = vmatpush.bf16.msra.mxu1 %v156_v0  ;;  %v153_v3 = vld [vmem:[%s245_s0] sm:$0xff]  ;;  %v154_v4 = vld [vmem:[%s245_s0 + $0x8] sm:$0xff] }
   0x3   :  { %25 = vst.msk [vmem:[#allocation2 + $0x10] sm:$0xff] %vm22_vm0, %v170_v1  ;;  %v158_v11 = vld [vmem:[%s246_s3] sm:$0xff]   ;;  %v165_v15 = vld [vmem:[%s246_s3 + $0x8] sm:$0xff]  }
   0x4   :  { %26 = vst.msk [vmem:[#allocation2 + $0x18] sm:$0xff] %vm22_vm0, %v170_v1  ;;  %v169_v14 = vld [vmem:[%s244_s2] ss:$0 sm:$0xff]  ;;  %v159_v18 = vunpack.c.l.bf16 %v158_v11  ;;  %v163_v22 = vunpack.c.l.bf16 %v165_v15  ;;  %v160_v30 = vunpack.c.h.bf16 %v158_v11  ;;  %v164_v32 = vunpack.c.h.bf16 %v165_v15 }
   0x6   :  { %75 = vmatpush.bf16.msra.mxu0 %v155_v2  ;;  %167 = vmatpush.bf16.msra.mxu1 %v155_v2 }
   0x8   :  { %v27_v5 = vld [vmem:[#allocation2] sm:$0xff] }
   0x9   :  { %151 = vmatmul.msk.bf16.vlgmr.msra.gmra.mxu0 %vm22_vm0, %v153_v3  ;;  %152 = vmatmul.msk.bf16.vlgmr.msra.gmra.mxu1 %vm22_vm0, %v154_v4  ;;  %v28_v12 = vld [vmem:[#allocation2 + $0x8] sm:$0xff] }
   0xa   :  { %v29_v6 = vld [vmem:[#allocation2 + $0x10] sm:$0xff] }
   0xb   :  { %v30_v13 = vld [vmem:[#allocation2 + $0x18] sm:$0xff] }
  0x86   :  { %v77_v7 = vpop.f32.mrf.mxu0  ;;  %v82_v8 = vpop.f32.mrf.mxu1 }
  0x87   :  { %v87_v9 = vadd.f32 %v77_v7, %v27_v5  ;;  %v89_v10 = vadd.f32 %v82_v8, %v29_v6 }
  0x89   :  { %91 = vst.msk [vmem:[#allocation2] sm:$0xff] %vm22_vm0, %v87_v9 }
  0x8a   :  { %93 = vst.msk [vmem:[#allocation2 + $0x10] sm:$0xff] %vm22_vm0, %v89_v10 }
  0x8e   :  { %v79_v16 = vpop.f32.mrf.mxu0  ;;  %v84_v17 = vpop.f32.mrf.mxu1 }
  0x8f   :  { %v88_v19 = vadd.f32 %v79_v16, %v28_v12  ;;  %v90_v20 = vadd.f32 %v84_v17, %v30_v13 }
  0x90   :  { %v98_v21 = vld [vmem:[#allocation2] sm:$0xff] }
  0x91   :  { %v106_v23 = vadd.f32 %v169_v14, %v98_v21  ;;  %v100_v24 = vld [vmem:[#allocation2 + $0x10] sm:$0xff]  ;;  %92 = vst.msk [vmem:[#allocation2 + $0x8] sm:$0xff] %vm22_vm0, %v88_v19 }
  0x92   :  { %v108_v25 = vadd.f32 %v169_v14, %v100_v24  ;;  %94 = vst.msk [vmem:[#allocation2 + $0x18] sm:$0xff] %vm22_vm0, %v90_v20 }
  0x93   :  { %v118_v26 = vadd.f32 %v159_v18, %v106_v23 }
  0x94   :  { %v120_v27 = vadd.f32 %v163_v22, %v108_v25 }
  0x95   :  { %v122_v28 = vpack.c.bf16 %v118_v26, %v118_v26 }
  0x96   :  { %v124_v29 = vpack.c.bf16 %v120_v27, %v120_v27 }
  0x97   :  { %127 = vst.msk [vmem:[%s247_s4] sm:$0xf] %vm126_vm1, %v122_v28 }
  0x98   :  { %129 = vst.msk [vmem:[%s247_s4 + $0x8] sm:$0xf] %vm126_vm1, %v124_v29  ;;  %v99_v31 = vld [vmem:[#allocation2 + $0x8] sm:$0xff] }
  0x99   :  { %v107_v33 = vadd.f32 %v169_v14, %v99_v31  ;;  %v101_v34 = vld [vmem:[#allocation2 + $0x18] sm:$0xff] }
  0x9a   :  { %v109_v35 = vadd.f32 %v169_v14, %v101_v34 }
  0x9b   :  { %v119_v36 = vadd.f32 %v160_v30, %v107_v33 }
  0x9c   :  { %v121_v37 = vadd.f32 %v164_v32, %v109_v35 }
  0x9d   :  { %v123_v38 = vpack.c.bf16 %v119_v36, %v119_v36 }
  0x9e   :  { %v125_v39 = vpack.c.bf16 %v121_v37, %v121_v37 }
  0x9f   :  { %128 = vst.msk [vmem:[%s247_s4 + $0x4] sm:$0xf] %vm126_vm1, %v123_v38 }
  0xa0   :  { %130 = vst.msk [vmem:[%s247_s4 + $0xc] sm:$0xf] %vm126_vm1, %v125_v39 }

// kernel: mix_transformer_encoder_layer.21
= control target key start
LH: loop header
LB: loop body
LE: loop exit
PB: predicated region body
PF: predicated region fallthrough
CT: control target
= control target key end

     0   :  { %s663_s12 = smov 0   ;;  %s665_s13 = smov 0   ;;  %s733_s0 = inlined_call_operand.vmem [shape: bf16[4,16,16], index: 0, kind: input, shape index: {}]   ;;  %s734_s1 = inlined_call_operand.vmem [shape: bf16[4,4,16], index: 1, kind: input, shape index: {}]   ;;  %s735_s2 = inlined_call_operand.vmem [shape: bf16[4,4,16], index: 2, kind: input, shape index: {}]   ;;  %s736_s3 = inlined_call_operand.vmem [shape: bf16[4,16,16], index: 3, kind: output, shape index: {}]  }
   0x1   :  { %s667_s14 = smov 0  }
   0x2 LB: > { %s32_s15 = sadd.s32 1, %s634_s13  ;;  %p556_p0 = scmp.ge.s32.totalorder %s638_s14, 1  ;;  %s638_s14 = sphi %s667_s14, %s13_s14   ;;  %s634_s13 = sphi %s665_s13, %s738_s13   ;;  %s630_s12 = sphi %s663_s12, %s737_s12  }
   0x3   : > { %p34_p1 = scmp.ge.s32.totalorder %s32_s15, 4  ;;  %p193_p2 = scmp.lt.s32.totalorder %s638_s14, 5 }
   0x5   : > { %s740_s15 = smov (%p34_p1, %s32_s15), 0  ;;  %p194_p3 = pnand %p556_p0, %p193_p2 }
   0x6   : > { %p240_p4 = scmp.lt.s32.totalorder (!%p194_p3), %s630_s12, 3 }
   0x7   : > { %197 = sbr.rel (%p194_p3) target bundleno = 657 (0x291), region = 32 }
   0xc   : > { %vm283_vm0 = vcmask 130048   ;;  %v640_v0 = vmov 0.0   ;;  %s742_s12 = smov (!%p240_p4, %s630_s12), 3  ;;  %vm278_vm1 = vcmask 7168   ;;  %v641_v4 = vmov -inf  }
   0xd   : > { %284 = vst.msk [vmem:[#allocation4] sm:$0xff] %vm283_vm0, %v640_v0  ;;  %s559_s16 = sshll.u32 %s742_s12, 1  ;;  %s571_s17 = sshll.u32 %s742_s12, 3  ;;  %vm318_vm2 = vcmask 31744   ;;  %v642_v9 = vmov 0   ;;  %vm382_vm3 = vcmask 1041408  }
   0xe   : > { %285 = vst.msk [vmem:[#allocation4 + $0x8] sm:$0xff] %vm283_vm0, %v640_v0  ;;  %s255_s20 = scalar_lea.vmem %s734_s1, %s559_s16  ;;  %s247_s23 = scalar_lea.vmem %s733_s0, %s571_s17  ;;  %601 = vset.pattern.permute.xlu1 %v642_v9  ;;  %602 = vset.pattern.permute.xlu0 %v642_v9  ;;  %vm429_vm4 = vcmask 125952  }
   0xf   : > { %v288_v1 = vld [vmem:[%s255_s20] sm:$0x3]  ;;  %279 = vst.msk [vmem:[#allocation2] sm:$0xff] %vm278_vm1, %v641_v4  ;;  %603 = vset.pattern.permute.xlu2 %v642_v9  ;;  %s262_s26 = scalar_lea.vmem %s735_s2, %s559_s16  ;;  %s271_s29 = scalar_lea.vmem %s736_s3, %s571_s17 }
  0x10   : > { %v300_v2 = vsel %vm283_vm0, %v288_v1, 0  ;;  %v573_v3 = vld [vmem:[%s247_s23] sm:$0xff]  ;;  %280 = vst.msk [vmem:[#allocation2 + $0x8] sm:$0xff] %vm278_vm1, %v641_v4 }
  0x11   : > { %309 = vmatpush.bf16.xpose.msra.mxu0 %v300_v2  ;;  %281 = vst.msk [vmem:[#allocation3] sm:$0xff] %vm278_vm1, %v640_v0  ;;  %v289_v22 = vld [vmem:[%s262_s26] sm:$0x3] }
  0x12   : > { %282 = vst.msk [vmem:[#allocation3 + $0x8] sm:$0xff] %vm278_vm1, %v640_v0  ;;  %v384_v23 = vsel %vm382_vm3, %v289_v22, 0 }
  0x13   : > { %393 = vmatpush.bf16.msra.mxu1 %v384_v23 }
  0x14   : > { %v364_v44 = vld [vmem:[#allocation4] sm:$0xff] }
  0x15   : > { %v365_v51 = vld [vmem:[#allocation4 + $0x8] sm:$0xff] }
  0x16   : > { %v316_v10 = vld [vmem:[#allocation2] sm:$0xff] }
  0x17   : > { %v317_v15 = vld [vmem:[#allocation2 + $0x8] sm:$0xff] }
  0x18   : > { %567 = vmatmul.msk.bf16.vlgmr.msra.gmra.mxu0 %vm283_vm0, %v573_v3  ;;  %v349_v35 = vld [vmem:[#allocation3] sm:$0xff] }
  0x19   : > { %v350_v39 = vld [vmem:[#allocation3 + $0x8] sm:$0xff] }
  0x95   : > { %v311_v5 = vpop.f32.mrf.mxu0 }
  0x96   : > { %v319_v6 = vsel %vm318_vm2, %v311_v5, -inf }
  0x97   : > { %320 = vmax.xlane.f32.xlu0 %v319_v6 }
  0x9d   : > { %v313_v7 = vpop.f32.mrf.mxu0 }
  0x9e   : > { %v322_v8 = vsel %vm318_vm2, %v313_v7, -inf }
  0x9f   : > { %323 = vmax.xlane.f32.xlu0 %v322_v8 }
 0x10a   : > { %v321_v11 = vpop.xlane.xlu0 %320 }
 0x10b   : > { %v325_v12 = vmax.f32 %v316_v10, %v321_v11 }
 0x10d   : > { %v327_v13 = vsub.f32 %v316_v10, %v325_v12  ;;  %404 = vst.msk [vmem:[#allocation2] sm:$0xff] %vm278_vm1, %v325_v12  ;;  %335 = vperm.xlu1 %601, %v325_v12  }
 0x10f   : > { %v329_v14 = vmul.f32 1.442695, %v327_v13 }
 0x111   : > { %604 = vpow2.f32 %v329_v14 }
 0x112   : > { %v324_v16 = vpop.xlane.xlu0 %323 }
 0x113   : > { %v326_v17 = vmax.f32 %v317_v15, %v324_v16 }
 0x115   : > { %v328_v18 = vsub.f32 %v317_v15, %v326_v17  ;;  %405 = vst.msk [vmem:[#allocation2 + $0x8] sm:$0xff] %vm278_vm1, %v326_v17  ;;  %340 = vperm.xlu1 %601, %v326_v17  }
 0x117   : > { %v605_v19 = vpop.eup %604  ;;  %v331_v20 = vmul.f32 1.442695, %v328_v18 }
 0x118   : > { %368 = vperm.xlu0 %602, %v605_v19   ;;  %v351_v36 = vmul.f32 %v605_v19, %v349_v35 }
 0x119   : > { %606 = vpow2.f32 %v331_v20 }
 0x11f   : > { %v607_v21 = vpop.eup %606 }
 0x120   : > { %373 = vperm.xlu1 %601, %v607_v21   ;;  %v352_v40 = vmul.f32 %v607_v21, %v350_v39 }
 0x17f   : > { %v336_v24 = vpop.permute.xlu1 %335 }
 0x180   : > { %v343_v25 = vsub.f32 %v311_v5, %v336_v24 }
 0x182   : > { %v345_v26 = vmul.f32 1.442695, %v343_v25 }
 0x184   : > { %608 = vpow2.f32 %v345_v26 }
 0x187   : > { %v341_v27 = vpop.permute.xlu1 %340 }
 0x188   : > { %v344_v28 = vsub.f32 %v313_v7, %v341_v27 }
 0x18a   : > { %v609_v29 = vpop.eup %608  ;;  %v347_v30 = vmul.f32 1.442695, %v344_v28  ;;  %v369_v45 = vpop.permute.xlu0 %368 }
 0x18b   : > { %v353_v31 = vsel %vm318_vm2, %v609_v29, 0.0  ;;  %v376_v47 = vmul.f32 %v369_v45, %v364_v44 }
 0x18c   : > { %610 = vpow2.f32 %v347_v30  ;;  %354 = vadd.xlane.f32.xlu2 %v353_v31 }
 0x192   : > { %v611_v32 = vpop.eup %610  ;;  %v374_v52 = vpop.permute.xlu1 %373 }
 0x193   : > { %v356_v33 = vsel %vm318_vm2, %v611_v32, 0.0  ;;  %v378_v34 = vpack.c.bf16 %v611_v32, %v609_v29  ;;  %v377_v54 = vmul.f32 %v374_v52, %v365_v51 }
 0x194   : > { %357 = vadd.xlane.f32.xlu2 %v356_v33 }
 0x195   : > { %568 = vmatmul.msk.bf16.vlgmr.msra.gmra.mxu1 %vm318_vm2, %v378_v34 }
 0x1ff   : > { %v355_v37 = vpop.xlane.xlu2 %354 }
 0x200   : > { %v359_v38 = vadd.f32 %v355_v37, %v351_v36 }
 0x202   : > { %362 = vst.msk [vmem:[#allocation3] sm:$0xff] %vm278_vm1, %v359_v38 }
 0x207   : > { %v358_v41 = vpop.xlane.xlu2 %357 }
 0x208   : > { %v360_v42 = vadd.f32 %v358_v41, %v352_v40 }
 0x209   : > { %v411_v43 = vld [vmem:[#allocation3] sm:$0xff] }
 0x20a   : > { %363 = vst.msk [vmem:[#allocation3 + $0x8] sm:$0xff] %vm278_vm1, %v360_v42  ;;  %612 = vrcp.f32 %v411_v43 }
 0x210   : > { %v613_v46 = vpop.eup %612 }
 0x211   : > { %417 = vperm.xlu2 %603, %v613_v46   ;;  %v412_v48 = vld [vmem:[#allocation3 + $0x8] sm:$0xff] }
 0x212   : > { %v395_v49 = vpop.f32.mrf.mxu1  ;;  %614 = vrcp.f32 %v412_v48 }
 0x213   : > { %v400_v50 = vadd.f32 %v395_v49, %v376_v47 }
 0x215   : > { %402 = vst.msk [vmem:[#allocation4] sm:$0xff] %vm283_vm0, %v400_v50 }
 0x218   : > { %v615_v53 = vpop.eup %614 }
 0x219   : > { %422 = vperm.xlu1 %601, %v615_v53  }
 0x21a   : > { %v397_v55 = vpop.f32.mrf.mxu1 }
 0x21b   : > { %v401_v56 = vadd.f32 %v397_v55, %v377_v54 }
 0x21c   : > { %v409_v58 = vld [vmem:[#allocation4] sm:$0xff] }
 0x21d   : > { %403 = vst.msk [vmem:[#allocation4 + $0x8] sm:$0xff] %vm283_vm0, %v401_v56 }
 0x224   : > { %v410_v61 = vld [vmem:[#allocation4 + $0x8] sm:$0xff] }
 0x26b   : > { %v418_v57 = vpop.permute.xlu2 %417 }
 0x26c   : > { %v425_v59 = vmul.f32 %v418_v57, %v409_v58 }
 0x26e   : > { %v427_v60 = vpack.c.bf16 %v425_v59, %v425_v59 }
 0x270   : > { %430 = vst.msk [vmem:[%s271_s29] sm:$0xf] %vm429_vm4, %v427_v60 }
 0x28b   : > { %v423_v62 = vpop.permute.xlu1 %422 }
 0x28c   : > { %v426_v63 = vmul.f32 %v423_v62, %v410_v61 }
 0x28e   : > { %v428_v0 = vpack.c.bf16 %v426_v63, %v426_v63 }
 0x290   : > { %431 = vst.msk [vmem:[%s271_s29 + $0x4] sm:$0xf] %vm429_vm4, %v428_v0 }
 0x291 PF: > { %s13_s14 = sadd.s32 1, %s638_s14   ;;  %s737_s12 = smov %s634_s13 }
 0x292   : > { %p10_p5 = scmp.ge.s32.totalorder %s13_s14, 6   ;;  %s738_s13 = smov %s740_s15 }
 0x294   :  { %12 = sbr.rel (!%p10_p5) target bundleno = 2 (0x2), region = 76 }

// kernel: mix_transformer_encoder_layer.23
= control target key start
LH: loop header
LB: loop body
LE: loop exit
PB: predicated region body
PF: predicated region fallthrough
CT: control target
= control target key end

     0   :  { %vm57_vm0 = vcmask 261120   ;;  %s195_s1 = inlined_call_operand.vmem [shape: bf16[32,128], index: 1, kind: input, shape index: {}]   ;;  %s196_s2 = inlined_call_operand.vmem [shape: f32[1,128], index: 2, kind: input, shape index: {}]   ;;  %s197_s0 = inlined_call_operand.vmem [shape: bf16[32,32], index: 0, kind: input, shape index: {}]   ;;  %s198_s3 = inlined_call_operand.vmem [shape: bf16[32,128], index: 3, kind: output, shape index: {}]  }
   0x1   :  { %v139_v0 = vld [vmem:[%s195_s1 + $0x8] sm:$0xff]  ;;  %v138_v1 = vld [vmem:[%s195_s1] sm:$0xff] }
   0x2   :  { %70 = vmatpush.bf16.msra.mxu0 %v139_v0  ;;  %151 = vmatpush.bf16.msra.mxu1 %v139_v0  ;;  %v136_v2 = vld [vmem:[%s197_s0] sm:$0xff]  ;;  %v137_v3 = vld [vmem:[%s197_s0 + $0x8] sm:$0xff] }
   0x3   :  { %v153_v6 = vld [vmem:[%s196_s2] ss:$0 sm:$0xff] }
   0x6   :  { %71 = vmatpush.bf16.msra.mxu0 %v138_v1  ;;  %152 = vmatpush.bf16.msra.mxu1 %v138_v1 }
   0x9   :  { %134 = vmatmul.msk.bf16.vlgmr.msra.gmra.mxu0 %vm57_vm0, %v136_v2  ;;  %135 = vmatmul.msk.bf16.vlgmr.msra.gmra.mxu1 %vm57_vm0, %v137_v3 }
  0x86   :  { %v73_v4 = vpop.f32.mrf.mxu0  ;;  %v78_v5 = vpop.f32.mrf.mxu1 }
  0x87   :  { %v102_v9 = vadd.f32 %v153_v6, %v73_v4  ;;  %v104_v10 = vadd.f32 %v153_v6, %v78_v5 }
  0x8e   :  { %v75_v7 = vpop.f32.mrf.mxu0  ;;  %v80_v8 = vpop.f32.mrf.mxu1 }
  0x8f   :  { %v103_v11 = vadd.f32 %v153_v6, %v75_v7  ;;  %v105_v12 = vadd.f32 %v153_v6, %v80_v8 }
  0x91   :  { %v143_v13 = vpack.c.bf16 %v103_v11, %v102_v9  ;;  %v148_v14 = vpack.c.bf16 %v105_v12, %v104_v10 }
  0x93   :  { %144 = vst [vmem:[%s198_s3] sm:$0xff] %v143_v13  }
  0x94   :  { %150 = vst [vmem:[%s198_s3 + $0x8] sm:$0xff] %v148_v14  }

// kernel: mix_transformer_encoder_layer.24
= control target key start
LH: loop header
LB: loop body
LE: loop exit
PB: predicated region body
PF: predicated region fallthrough
CT: control target
= control target key end

     0   :  { %s639_s12 = smov 0   ;;  %s641_s13 = smov 0   ;;  %s727_s0 = inlined_call_operand.vmem [shape: bf16[2,4,4,128], index: 0, kind: input, shape index: {}]   ;;  %s728_s1 = inlined_call_operand.vmem [shape: f32[3,3,128], index: 1, kind: input, shape index: {}]   ;;  %s729_s2 = inlined_call_operand.vmem [shape: f32[1,1,128], index: 2, kind: input, shape index: {}]   ;;  %s730_s3 = inlined_call_operand.vmem [shape: bf16[2,4,4,128], index: 3, kind: output, shape index: {}]  }
   0x1   :  { %s643_s14 = smov 0  }
   0x2 LB: > { %s25_s15 = sadd.s32 1, %s612_s13  ;;  %p551_p0 = scmp.ge.s32.totalorder %s616_s14, 1  ;;  %s616_s14 = sphi %s643_s14, %s13_s14   ;;  %s612_s13 = sphi %s641_s13, %s732_s13   ;;  %s608_s12 = sphi %s639_s12, %s731_s12  }
   0x3   : > { %p27_p1 = scmp.ge.s32.totalorder %s25_s15, 2  ;;  %p173_p2 = scmp.lt.s32.totalorder %s616_s14, 3 }
   0x5   : > { %s734_s15 = smov (%p27_p1, %s25_s15), 0  ;;  %p174_p3 = pnand %p551_p0, %p173_p2 }
   0x6   : > { %p210_p4 = scmp.lt.s32.totalorder (!%p174_p3), %s608_s12, 1 }
   0x7   : > { %177 = sbr.rel (%p174_p3) target bundleno = 84 (0x54), region = 32 }
   0xc   : > { %v618_v0 = vmov 0.0   ;;  %s736_s12 = smov (!%p210_p4, %s608_s12), 1  ;;  %v261_v2 = vld [vmem:[%s728_s1] sm:$0x7]  ;;  %v262_v13 = vld [vmem:[%s728_s1 + $0x4] sm:$0x7] }
   0xd   : > { %233 = vst [vmem:[#allocation2] sm:$0x3f] %v618_v0  ;;  %s558_s16 = sshll.u32 %s736_s12, 3  ;;  %v281_v4 = vperm.slane %v261_v2, 1  ;;  %v268_v5 = vperm.slane %v261_v2, 0  ;;  %v294_v11 = vperm.slane %v261_v2, 2 }
   0xe   : > { %235 = vst [vmem:[#allocation2 + $0x28] sm:$0x3f] %v618_v0  ;;  %s217_s19 = scalar_lea.vmem %s727_s0, %s558_s16  ;;  %v671_v16 = vperm.slane %v262_v13, 0  ;;  %v263_v20 = vld [vmem:[%s728_s1 + $0x8] sm:$0x7]  ;;  %v676_v25 = vperm.slane %v262_v13, 1  ;;  %s232_s30 = scalar_lea.vmem %s730_s3, %s558_s16 }
   0xf   : > { %236 = vst [vmem:[#allocation2] sm:$0x1] %v618_v0  ;;  %v248_v1 = vld [vmem:[%s217_s19] sm:$0xff]   ;;  %v678_v31 = vperm.slane %v262_v13, 2  ;;  %v681_v41 = vperm.slane %v263_v20, 0  ;;  %v686_v54 = vperm.slane %v263_v20, 1 }
  0x10   : > { %237 = vst [vmem:[#allocation2 + $0x8] sm:$0x1] %v618_v0  ;;  %v252_v3 = vunpack.c.l.bf16 %v248_v1  ;;  %v254_v8 = vunpack.c.h.bf16 %v248_v1  ;;  %v688_v55 = vperm.slane %v263_v20, 2 }
  0x11   : > { %238 = vst [vmem:[#allocation2 + $0x10] sm:$0x1] %v618_v0 }
  0x12   : > { %239 = vst [vmem:[#allocation2 + $0x18] sm:$0x1] %v618_v0 }
  0x13   : > { %240 = vst [vmem:[#allocation2 + $0x20] sm:$0x1] %v618_v0 }
  0x14   : > { %242 = vst [vmem:[#allocation2 + $0x5] sm:$0x1] %v618_v0  ;;  %v277_v6 = vld [vmem:[#allocation2 + $0x1] sm:$0xf] }
  0x15   : > { %243 = vst [vmem:[#allocation2 + $0xd] sm:$0x1] %v618_v0  ;;  %v282_v9 = vmul.f32 %v281_v4, %v277_v6 }
  0x16   : > { %244 = vst [vmem:[#allocation2 + $0x15] sm:$0x1] %v618_v0  ;;  %v264_v7 = vld [vmem:[#allocation2] sm:$0xf] }
  0x17   : > { %245 = vst [vmem:[#allocation2 + $0x1d] sm:$0x1] %v618_v0  ;;  %v269_v10 = vmul.f32 %v268_v5, %v264_v7 }
  0x18   : > { %246 = vst [vmem:[#allocation2 + $0x25] sm:$0x1] %v618_v0 }
  0x19   : > { %241 = vst [vmem:[#allocation2 + $0x28] sm:$0x1] %v618_v0  ;;  %v286_v14 = vadd.f32 %v282_v9, %v269_v10 }
  0x1a   : > { %247 = vst [vmem:[#allocation2 + $0x2d] sm:$0x1] %v618_v0 }
  0x1b   : > { %257 = vst [vmem:[#allocation2 + $0x9] sm:$0xf] %v252_v3  ;;  %v290_v12 = vld [vmem:[#allocation2 + $0x2] sm:$0xf] }
  0x1c   : > { %258 = vst [vmem:[#allocation2 + $0xd] sm:$0xf0] %v252_v3  ;;  %v295_v15 = vmul.f32 %v294_v11, %v290_v12 }
  0x1d   : > { %259 = vst [vmem:[#allocation2 + $0x19] sm:$0xf] %v254_v8 }
  0x1e   : > { %260 = vst [vmem:[#allocation2 + $0x1d] sm:$0xf0] %v254_v8  ;;  %v299_v30 = vadd.f32 %v295_v15, %v286_v14 }
  0x22   : > { %v265_v17 = vld [vmem:[#allocation2 + $0x8] sm:$0xf] }
  0x23   : > { %v278_v18 = vld [vmem:[#allocation2 + $0x9] sm:$0xf]  ;;  %v270_v21 = vmul.f32 %v268_v5, %v265_v17  ;;  %v266_v23 = vld [vmem:[#allocation2 + $0x10] sm:$0xf] }
  0x24   : > { %v291_v19 = vld [vmem:[#allocation2 + $0xa] sm:$0xf]  ;;  %v283_v22 = vmul.f32 %v281_v4, %v278_v18  ;;  %v279_v24 = vld [vmem:[#allocation2 + $0x11] sm:$0xf]  ;;  %v271_v26 = vmul.f32 %v268_v5, %v266_v23  ;;  %v267_v29 = vld [vmem:[#allocation2 + $0x18] sm:$0xf] }
  0x25   : > { %v284_v27 = vmul.f32 %v281_v4, %v279_v24  ;;  %v292_v28 = vld [vmem:[#allocation2 + $0x12] sm:$0xf]  ;;  %v280_v32 = vld [vmem:[#allocation2 + $0x19] sm:$0xf]  ;;  %v303_v33 = vld [vmem:[#allocation2 + $0x8] sm:$0xf]  ;;  %v296_v36 = vmul.f32 %v294_v11, %v291_v19  ;;  %v272_v40 = vmul.f32 %v268_v5, %v267_v29 }
  0x26   : > { %v316_v34 = vld [vmem:[#allocation2 + $0x9] sm:$0xf]  ;;  %v287_v35 = vadd.f32 %v283_v22, %v270_v21  ;;  %v308_v37 = vmul.f32 %v671_v16, %v303_v33  ;;  %v304_v43 = vld [vmem:[#allocation2 + $0x10] sm:$0xf]  ;;  %v297_v45 = vmul.f32 %v294_v11, %v292_v28  ;;  %v285_v46 = vmul.f32 %v281_v4, %v280_v32  ;;  %v293_v47 = vld [vmem:[#allocation2 + $0x1a] sm:$0xf] }
  0x27   : > { %v329_v38 = vld [vmem:[#allocation2 + $0xa] sm:$0xf]  ;;  %v288_v39 = vadd.f32 %v284_v27, %v271_v26  ;;  %v317_v44 = vld [vmem:[#allocation2 + $0x11] sm:$0xf]  ;;  %v321_v49 = vmul.f32 %v676_v25, %v316_v34  ;;  %v309_v51 = vmul.f32 %v671_v16, %v304_v43  ;;  %v305_v57 = vld [vmem:[#allocation2 + $0x18] sm:$0xf]  ;;  %v298_v6 = vmul.f32 %v294_v11, %v293_v47 }
  0x28   : > { %v300_v42 = vadd.f32 %v296_v36, %v287_v35  ;;  %v312_v48 = vadd.f32 %v308_v37, %v299_v30  ;;  %v343_v50 = vld [vmem:[#allocation2 + $0x10] sm:$0xf]  ;;  %v334_v53 = vmul.f32 %v678_v31, %v329_v38  ;;  %v318_v58 = vld [vmem:[#allocation2 + $0x19] sm:$0xf]  ;;  %v322_v62 = vmul.f32 %v676_v25, %v317_v44  ;;  %v306_v7 = vld [vmem:[#allocation2 + $0x20] sm:$0xf] }
  0x29   : > { %v330_v52 = vld [vmem:[#allocation2 + $0x12] sm:$0xf]  ;;  %v301_v56 = vadd.f32 %v297_v45, %v288_v39  ;;  %v344_v63 = vld [vmem:[#allocation2 + $0x18] sm:$0xf]  ;;  %v310_v0 = vmul.f32 %v671_v16, %v305_v57  ;;  %v348_v2 = vmul.f32 %v681_v41, %v343_v50  ;;  %v323_v5 = vmul.f32 %v676_v25, %v318_v58  ;;  %v345_v13 = vld [vmem:[#allocation2 + $0x20] sm:$0xf] }
  0x2a   : > { %v325_v59 = vadd.f32 %v321_v49, %v312_v48  ;;  %v356_v60 = vld [vmem:[#allocation2 + $0x11] sm:$0xf]  ;;  %v313_v61 = vadd.f32 %v309_v51, %v300_v42  ;;  %v331_v1 = vld [vmem:[#allocation2 + $0x1a] sm:$0xf]  ;;  %v335_v4 = vmul.f32 %v678_v31, %v330_v52  ;;  %v289_v14 = vadd.f32 %v285_v46, %v272_v40  ;;  %v319_v15 = vld [vmem:[#allocation2 + $0x21] sm:$0xf] }
  0x2b   : > { %v369_v3 = vld [vmem:[#allocation2 + $0x12] sm:$0xf]  ;;  %v357_v10 = vld [vmem:[#allocation2 + $0x19] sm:$0xf]  ;;  %v314_v12 = vadd.f32 %v310_v0, %v301_v56  ;;  %v361_v17 = vmul.f32 %v686_v54, %v356_v60  ;;  %v349_v18 = vmul.f32 %v681_v41, %v344_v63  ;;  %v336_v19 = vmul.f32 %v678_v31, %v331_v1  ;;  %v358_v24 = vld [vmem:[#allocation2 + $0x21] sm:$0xf] }
  0x2c   : > { %v338_v8 = vadd.f32 %v334_v53, %v325_v59  ;;  %v326_v9 = vadd.f32 %v322_v62, %v313_v61  ;;  %v311_v20 = vmul.f32 %v671_v16, %v306_v7  ;;  %v370_v23 = vld [vmem:[#allocation2 + $0x1a] sm:$0xf]  ;;  %v302_v26 = vadd.f32 %v298_v6, %v289_v14  ;;  %v332_v27 = vld [vmem:[#allocation2 + $0x22] sm:$0xf]  ;;  %v585_v16 = vld [vmem:[%s729_s2] ss:$0 sm:$0xff] }
  0x2d   : > { %v327_v11 = vadd.f32 %v323_v5, %v314_v12  ;;  %v374_v28 = vmul.f32 %v688_v55, %v369_v3  ;;  %v362_v29 = vmul.f32 %v686_v54, %v357_v10  ;;  %v350_v30 = vmul.f32 %v681_v41, %v345_v13  ;;  %v371_v36 = vld [vmem:[#allocation2 + $0x22] sm:$0xf]  ;;  %v346_v38 = vld [vmem:[#allocation2 + $0x28] sm:$0xf] }
  0x2e   : > { %v352_v21 = vadd.f32 %v348_v2, %v338_v8  ;;  %v339_v22 = vadd.f32 %v335_v4, %v326_v9  ;;  %v324_v32 = vmul.f32 %v676_v25, %v319_v15  ;;  %v315_v37 = vadd.f32 %v311_v20, %v302_v26  ;;  %v359_v52 = vld [vmem:[#allocation2 + $0x29] sm:$0xf] }
  0x2f   : > { %v340_v35 = vadd.f32 %v336_v19, %v327_v11  ;;  %v375_v39 = vmul.f32 %v688_v55, %v370_v23  ;;  %v363_v40 = vmul.f32 %v686_v54, %v358_v24  ;;  %v337_v42 = vmul.f32 %v678_v31, %v332_v27  ;;  %v372_v58 = vld [vmem:[#allocation2 + $0x2a] sm:$0xf] }
  0x30   : > { %v365_v33 = vadd.f32 %v361_v17, %v352_v21  ;;  %v353_v34 = vadd.f32 %v349_v18, %v339_v22  ;;  %v328_v25 = vadd.f32 %v324_v32, %v315_v37  ;;  %v376_v46 = vmul.f32 %v688_v55, %v371_v36 }
  0x31   : > { %v354_v45 = vadd.f32 %v350_v30, %v340_v35  ;;  %v351_v47 = vmul.f32 %v681_v41, %v346_v38  ;;  %v364_v31 = vmul.f32 %v686_v54, %v359_v52  ;;  %v377_v0 = vmul.f32 %v688_v55, %v372_v58 }
  0x32   : > { %v378_v43 = vadd.f32 %v374_v28, %v365_v33  ;;  %v366_v44 = vadd.f32 %v362_v29, %v353_v34  ;;  %v341_v51 = vadd.f32 %v337_v42, %v328_v25 }
  0x33   : > { %v367_v50 = vadd.f32 %v363_v40, %v354_v45 }
  0x34   : > { %v386_v48 = vadd.f32 %v585_v16, %v378_v43  ;;  %v379_v49 = vadd.f32 %v375_v39, %v366_v44  ;;  %v355_v59 = vadd.f32 %v351_v47, %v341_v51 }
  0x35   : > { %v380_v57 = vadd.f32 %v376_v46, %v367_v50 }
  0x36   : > { %v394_v53 = vmul.f32 0.044715, %v386_v48  ;;  %v387_v56 = vadd.f32 %v585_v16, %v379_v49  ;;  %v368_v63 = vadd.f32 %v364_v31, %v355_v59  ;;  %v390_v19 = vmul.f32 0.5, %v386_v48 }
  0x37   : > { %v388_v62 = vadd.f32 %v585_v16, %v380_v57 }
  0x38   : > { %v398_v60 = vmul.f32 %v394_v53, %v386_v48  ;;  %v395_v61 = vmul.f32 0.044715, %v387_v56  ;;  %v381_v3 = vadd.f32 %v377_v0, %v368_v63  ;;  %v391_v11 = vmul.f32 0.5, %v387_v56 }
  0x39   : > { %v396_v2 = vmul.f32 0.044715, %v388_v62  ;;  %v392_v29 = vmul.f32 0.5, %v388_v62 }
  0x3a   : > { %v402_v1 = vmul.f32 %v398_v60, %v386_v48  ;;  %v399_v41 = vmul.f32 %v395_v61, %v387_v56  ;;  %v389_v7 = vadd.f32 %v585_v16, %v381_v3 }
  0x3b   : > { %v400_v6 = vmul.f32 %v396_v2, %v388_v62 }
  0x3c   : > { %v406_v4 = vadd.f32 %v402_v1, %v386_v48  ;;  %v403_v5 = vmul.f32 %v399_v41, %v387_v56  ;;  %v397_v12 = vmul.f32 0.044715, %v389_v7  ;;  %v393_v35 = vmul.f32 0.5, %v389_v7 }
  0x3d   : > { %v404_v10 = vmul.f32 %v400_v6, %v388_v62 }
  0x3e   : > { %v410_v8 = vmul.f32 0.7978846, %v406_v4  ;;  %v407_v9 = vadd.f32 %v403_v5, %v387_v56  ;;  %v401_v14 = vmul.f32 %v397_v12, %v389_v7 }
  0x3f   : > { %v408_v13 = vadd.f32 %v404_v10, %v388_v62 }
  0x40   : > { %586 = vtanh.f32 %v410_v8  ;;  %v411_v54 = vmul.f32 0.7978846, %v407_v9  ;;  %v405_v55 = vmul.f32 %v401_v14, %v389_v7 }
  0x41   : > { %v412_v15 = vmul.f32 0.7978846, %v408_v13 }
  0x42   : > { %588 = vtanh.f32 %v411_v54  ;;  %v409_v17 = vadd.f32 %v405_v55, %v389_v7 }
  0x43   : > { %590 = vtanh.f32 %v412_v15 }
  0x44   : > { %v413_v21 = vmul.f32 0.7978846, %v409_v17 }
  0x46   : > { %v587_v18 = vpop.eup %586  ;;  %592 = vtanh.f32 %v413_v21 }
  0x47   : > { %v418_v20 = vadd.f32 1.0, %v587_v18 }
  0x48   : > { %v589_v22 = vpop.eup %588 }
  0x49   : > { %v422_v23 = vmul.f32 %v418_v20, %v390_v19  ;;  %v419_v24 = vadd.f32 1.0, %v589_v22  ;;  %v591_v26 = vpop.eup %590 }
  0x4a   : > { %v420_v30 = vadd.f32 1.0, %v591_v26 }
  0x4b   : > { %v426_v27 = vpack.c.bf16 %v422_v23, %v422_v23  ;;  %v423_v28 = vmul.f32 %v419_v24, %v391_v11 }
  0x4c   : > { %v424_v33 = vmul.f32 %v420_v30, %v392_v29  ;;  %v593_v16 = vpop.eup %592 }
  0x4d   : > { %430 = vst [vmem:[%s232_s30] sm:$0x3] %v426_v27  ;;  %v427_v32 = vpack.c.bf16 %v423_v28, %v423_v28  ;;  %v421_v36 = vadd.f32 1.0, %v593_v16 }
  0x4e   : > { %v428_v34 = vpack.c.bf16 %v424_v33, %v424_v33 }
  0x4f   : > { %431 = vst [vmem:[%s232_s30 + $0x2] sm:$0x3] %v427_v32  ;;  %v425_v37 = vmul.f32 %v421_v36, %v393_v35 }
  0x50   : > { %432 = vst [vmem:[%s232_s30 + $0x4] sm:$0x3] %v428_v34 }
  0x51   : > { %v429_v38 = vpack.c.bf16 %v425_v37, %v425_v37 }
  0x53   : > { %433 = vst [vmem:[%s232_s30 + $0x6] sm:$0x3] %v429_v38 }
  0x54 PF: > { %s13_s14 = sadd.s32 1, %s616_s14   ;;  %s731_s12 = smov %s612_s13 }
  0x55   : > { %p10_p5 = scmp.ge.s32.totalorder %s13_s14, 4   ;;  %s732_s13 = smov %s734_s15 }
  0x57   :  { %12 = sbr.rel (!%p10_p5) target bundleno = 2 (0x2), region = 71 }

// kernel: mix_transformer_encoder_layer.25
= control target key start
LH: loop header
LB: loop body
LE: loop exit
PB: predicated region body
PF: predicated region fallthrough
CT: control target
= control target key end

     0   :  { %vm27_vm0 = vcmask 261120   ;;  %v377_v2 = vmov 0.0   ;;  %v378_v46 = vmov 32.0   ;;  %vm286_vm10 = vcmask 257024   ;;  %s506_s1 = inlined_call_operand.vmem [shape: bf16[128,32], index: 1, kind: input, shape index: {}]   ;;  %s507_s0 = inlined_call_operand.vmem [shape: bf16[32,128], index: 0, kind: input, shape index: {}]   ;;  %s508_s2 = inlined_call_operand.vmem [shape: f32[1,32], index: 2, kind: input, shape index: {}]   ;;  %s509_s3 = inlined_call_operand.vmem [shape: bf16[32,32], index: 3, kind: input, shape index: {}]   ;;  %s510_s4 = inlined_call_operand.vmem [shape: f32[1,32], index: 4, kind: input, shape index: {}]   ;;  %s511_s5 = inlined_call_operand.vmem [shape: f32[1,32], index: 5, kind: input, shape index: {}]   ;;  %s512_s6 = inlined_call_operand.vmem [shape: bf16[32,32], index: 6, kind: output, shape index: {}]  }
   0x1   :  { %v344_v0 = vld [vmem:[%s506_s1 + $0x38] sm:$0xff]  ;;  %v343_v1 = vld [vmem:[%s506_s1 + $0x30] sm:$0xff]  ;;  %28 = vst.msk [vmem:[#allocation2] sm:$0xff] %vm27_vm0, %v377_v2  ;;  %v342_v3 = vld [vmem:[%s506_s1 + $0x28] sm:$0xff]  ;;  %367 = vrcp.f32 %v378_v46 }
   0x2   :  { %116 = vmatpush.bf16.msra.mxu0 %v344_v0  ;;  %354 = vmatpush.bf16.msra.mxu1 %v344_v0  ;;  %29 = vst.msk [vmem:[#allocation2 + $0x8] sm:$0xff] %vm27_vm0, %v377_v2  ;;  %v341_v4 = vld [vmem:[%s506_s1 + $0x20] sm:$0xff]  ;;  %v340_v5 = vld [vmem:[%s506_s1 + $0x18] sm:$0xff]  ;;  %v339_v6 = vld [vmem:[%s506_s1 + $0x10] sm:$0xff] }
   0x3   :  { %30 = vst.msk [vmem:[#allocation2 + $0x10] sm:$0xff] %vm27_vm0, %v377_v2  ;;  %v338_v7 = vld [vmem:[%s506_s1 + $0x8] sm:$0xff]  ;;  %v337_v8 = vld [vmem:[%s506_s1] sm:$0xff] }
   0x4   :  { %31 = vst.msk [vmem:[#allocation2 + $0x18] sm:$0xff] %vm27_vm0, %v377_v2  ;;  %v335_v9 = vld [vmem:[%s507_s0] sm:$0xff]  ;;  %v336_v10 = vld [vmem:[%s507_s0 + $0x8] sm:$0xff] }
   0x5   :  { %v346_v19 = vld [vmem:[%s509_s3] sm:$0xff]   ;;  %v353_v21 = vld [vmem:[%s509_s3 + $0x8] sm:$0xff]  }
   0x6   :  { %117 = vmatpush.bf16.msra.mxu0 %v343_v1  ;;  %355 = vmatpush.bf16.msra.mxu1 %v343_v1  ;;  %v364_v20 = vld [vmem:[%s508_s2] ss:$0 sm:$0xff]  ;;  %v347_v26 = vunpack.c.l.bf16 %v346_v19  ;;  %v351_v27 = vunpack.c.l.bf16 %v353_v21  ;;  %v348_v36 = vunpack.c.h.bf16 %v346_v19  ;;  %v352_v37 = vunpack.c.h.bf16 %v353_v21 }
   0x7   :  { %v368_v47 = vpop.eup %367 }
   0x8   :  { %v32_v11 = vld [vmem:[#allocation2] sm:$0xff]  ;;  %v184_v48 = vmul.f32 32.0, %v368_v47  ;;  %vm188_vm1 = vweird.f32 %v368_v47 }
   0x9   :  { %v33_v17 = vld [vmem:[#allocation2 + $0x8] sm:$0xff] }
   0xa   :  { %118 = vmatpush.bf16.msra.mxu0 %v342_v3  ;;  %356 = vmatpush.bf16.msra.mxu1 %v342_v3  ;;  %v34_v12 = vld [vmem:[#allocation2 + $0x10] sm:$0xff]  ;;  %v185_v49 = vsub.f32 1.0, %v184_v48 }
   0xb   :  { %v35_v18 = vld [vmem:[#allocation2 + $0x18] sm:$0xff] }
   0xc   :  { %v186_v50 = vmul.f32 %v368_v47, %v185_v49 }
   0xe   :  { %119 = vmatpush.bf16.msra.mxu0 %v341_v4  ;;  %357 = vmatpush.bf16.msra.mxu1 %v341_v4  ;;  %v187_v51 = vadd.f32 %v368_v47, %v186_v50 }
  0x10   :  { %v189_v52 = vsel %vm188_vm1, %v368_v47, %v187_v51 }
  0x12   :  { %120 = vmatpush.bf16.msra.mxu0 %v340_v5  ;;  %358 = vmatpush.bf16.msra.mxu1 %v340_v5 }
  0x16   :  { %121 = vmatpush.bf16.msra.mxu0 %v339_v6  ;;  %359 = vmatpush.bf16.msra.mxu1 %v339_v6 }
  0x1a   :  { %122 = vmatpush.bf16.msra.mxu0 %v338_v7  ;;  %360 = vmatpush.bf16.msra.mxu1 %v338_v7 }
  0x1e   :  { %123 = vmatpush.bf16.msra.mxu0 %v337_v8  ;;  %361 = vmatpush.bf16.msra.mxu1 %v337_v8 }
  0x21   :  { %124 = vmatmul.bf16.vlgmr.msra.gmra.mxu0 %v335_v9  ;;  %129 = vmatmul.bf16.vlgmr.msra.gmra.mxu1 %v336_v10 }
  0x9e   :  { %v125_v13 = vpop.f32.mrf.mxu0  ;;  %v130_v14 = vpop.f32.mrf.mxu1 }
  0x9f   :  { %v135_v15 = vadd.f32 %v125_v13, %v32_v11  ;;  %v137_v16 = vadd.f32 %v130_v14, %v34_v12 }
  0xa1   :  { %140 = vst.msk [vmem:[#allocation2] sm:$0xff] %vm27_vm0, %v135_v15 }
  0xa2   :  { %142 = vst.msk [vmem:[#allocation2 + $0x10] sm:$0xff] %vm27_vm0, %v137_v16 }
  0xa6   :  { %v127_v22 = vpop.f32.mrf.mxu0  ;;  %v132_v23 = vpop.f32.mrf.mxu1 }
  0xa7   :  { %v136_v24 = vadd.f32 %v127_v22, %v33_v17  ;;  %v138_v25 = vadd.f32 %v132_v23, %v35_v18 }
  0xa8   :  { %v147_v28 = vld [vmem:[#allocation2] sm:$0xff] }
  0xa9   :  { %141 = vst.msk [vmem:[#allocation2 + $0x8] sm:$0xff] %vm27_vm0, %v136_v24  ;;  %v149_v29 = vld [vmem:[#allocation2 + $0x10] sm:$0xff]  ;;  %v155_v30 = vadd.f32 %v364_v20, %v147_v28 }
  0xaa   :  { %143 = vst.msk [vmem:[#allocation2 + $0x18] sm:$0xff] %vm27_vm0, %v138_v25  ;;  %v157_v31 = vadd.f32 %v364_v20, %v149_v29 }
  0xab   :  { %v167_v32 = vadd.f32 %v347_v26, %v155_v30 }
  0xac   :  { %v169_v33 = vadd.f32 %v351_v27, %v157_v31 }
  0xad   :  { %v171_v34 = vsel %vm27_vm0, %v167_v32, 0.0 }
  0xae   :  { %v177_v35 = vsel %vm27_vm0, %v169_v33, 0.0  ;;  %172 = vadd.xlane.f32.xlu0 %v171_v34 }
  0xaf   :  { %178 = vadd.xlane.f32.xlu1 %v177_v35  ;;  %v365_v35 = vld [vmem:[%s510_s4] ss:$0 sm:$0xff] }
  0xb0   :  { %v148_v38 = vld [vmem:[#allocation2 + $0x8] sm:$0xff] }
  0xb1   :  { %v150_v39 = vld [vmem:[#allocation2 + $0x18] sm:$0xff]  ;;  %v156_v40 = vadd.f32 %v364_v20, %v148_v38 }
  0xb2   :  { %v158_v41 = vadd.f32 %v364_v20, %v150_v39 }
  0xb3   :  { %v168_v42 = vadd.f32 %v348_v36, %v156_v40  ;;  %v366_v40 = vld [vmem:[%s511_s5] ss:$0 sm:$0xff] }
  0xb4   :  { %v170_v43 = vadd.f32 %v352_v37, %v158_v41 }
  0xb5   :  { %v174_v44 = vsel %vm27_vm0, %v168_v42, 0.0 }
  0xb6   :  { %v180_v45 = vsel %vm27_vm0, %v170_v43, 0.0  ;;  %175 = vadd.xlane.f32.xlu0 %v174_v44 }
  0xb7   :  { %181 = vadd.xlane.f32.xlu1 %v180_v45 }
 0x121   :  { %v173_v53 = vpop.xlane.xlu0 %172 }
 0x122   :  { %v179_v54 = vpop.xlane.xlu1 %178  ;;  %v190_v55 = vmul.f32 %v189_v52, %v173_v53 }
 0x123   :  { %v192_v56 = vmul.f32 %v189_v52, %v179_v54 }
 0x124   :  { %v194_v57 = vsub.f32 %v167_v32, %v190_v55 }
 0x125   :  { %v465_v58 = vsub.f32 %v169_v33, %v192_v56 }
 0x126   :  { %v198_v59 = vmul.f32 %v194_v57, %v194_v57 }
 0x127   :  { %v200_v60 = vmul.f32 %v465_v58, %v465_v58 }
 0x128   :  { %v202_v61 = vsel %vm27_vm0, %v198_v59, 0.0 }
 0x129   :  { %203 = vadd.xlane.f32.xlu2 %v202_v61  ;;  %v208_v62 = vsel %vm27_vm0, %v200_v60, 0.0  ;;  %v176_v63 = vpop.xlane.xlu0 %175 }
 0x12a   :  { %v182_v0 = vpop.xlane.xlu1 %181  ;;  %209 = vadd.xlane.f32.xlu0 %v208_v62  ;;  %v191_v1 = vmul.f32 %v189_v52, %v176_v63 }
 0x12b   :  { %v193_v2 = vmul.f32 %v189_v52, %v182_v0 }
 0x12c   :  { %v471_v3 = vsub.f32 %v168_v42, %v191_v1 }
 0x12d   :  { %v473_v4 = vsub.f32 %v170_v43, %v193_v2 }
 0x12e   :  { %v199_v5 = vmul.f32 %v471_v3, %v471_v3 }
 0x12f   :  { %v201_v6 = vmul.f32 %v473_v4, %v473_v4 }
 0x130   :  { %v205_v7 = vsel %vm27_vm0, %v199_v5, 0.0 }
 0x131   :  { %v211_v8 = vsel %vm27_vm0, %v201_v6, 0.0  ;;  %206 = vadd.xlane.f32.xlu2 %v205_v7 }
 0x132   :  { %212 = vadd.xlane.f32.xlu1 %v211_v8 }
 0x19c   :  { %v204_v9 = vpop.xlane.xlu2 %203 }
 0x19d   :  { %v214_v10 = vmul.f32 %v204_v9, %v189_v52  ;;  %v210_v11 = vpop.xlane.xlu0 %209 }
 0x19e   :  { %v216_v12 = vmul.f32 %v210_v11, %v189_v52 }
 0x19f   :  { %v218_v13 = vadd.f32 1e-05, %v214_v10 }
 0x1a0   :  { %v220_v14 = vadd.f32 1e-05, %v216_v12 }
 0x1a1   :  { %369 = vrsqrt.f32 %v218_v13  ;;  %vm228_vm4 = vweird.f32 %v218_v13 }
 0x1a2   :  { %371 = vrsqrt.f32 %v220_v14  ;;  %vm248_vm6 = vweird.f32 %v220_v14 }
 0x1a4   :  { %v207_v15 = vpop.xlane.xlu2 %206 }
 0x1a5   :  { %v213_v16 = vpop.xlane.xlu1 %212  ;;  %v215_v17 = vmul.f32 %v207_v15, %v189_v52 }
 0x1a6   :  { %v217_v18 = vmul.f32 %v213_v16, %v189_v52 }
 0x1a7   :  { %v370_v19 = vpop.eup %369  ;;  %v219_v20 = vadd.f32 1e-05, %v215_v17 }
 0x1a8   :  { %v372_v21 = vpop.eup %371  ;;  %v223_v22 = vmul.f32 %v370_v19, %v218_v13  ;;  %v221_v23 = vadd.f32 1e-05, %v217_v18  ;;  %vm229_vm2 = vweird.f32 %v370_v19 }
 0x1a9   :  { %v243_v24 = vmul.f32 %v372_v21, %v220_v14  ;;  %373 = vrsqrt.f32 %v219_v20  ;;  %vm249_vm3 = vweird.f32 %v372_v21  ;;  %vm230_vm5 = vmor %vm228_vm4, %vm229_vm2  ;;  %vm238_vm11 = vweird.f32 %v219_v20 }
 0x1aa   :  { %v224_v25 = vmul.f32 %v370_v19, %v223_v22  ;;  %375 = vrsqrt.f32 %v221_v23  ;;  %vm250_vm7 = vmor %vm248_vm6, %vm249_vm3  ;;  %vm258_vm12 = vweird.f32 %v221_v23 }
 0x1ab   :  { %v244_v26 = vmul.f32 %v372_v21, %v243_v24 }
 0x1ac   :  { %v225_v27 = vmul.f32 0.5, %v224_v25 }
 0x1ad   :  { %v245_v28 = vmul.f32 0.5, %v244_v26 }
 0x1ae   :  { %v226_v29 = vsub.f32 1.5, %v225_v27 }
 0x1af   :  { %v374_v30 = vpop.eup %373  ;;  %v246_v31 = vsub.f32 1.5, %v245_v28 }
 0x1b0   :  { %v376_v32 = vpop.eup %375  ;;  %v227_v33 = vmul.f32 %v370_v19, %v226_v29  ;;  %v233_v34 = vmul.f32 %v374_v30, %v219_v20  ;;  %vm239_vm8 = vweird.f32 %v374_v30 }
 0x1b1   :  { %v247_v36 = vmul.f32 %v372_v21, %v246_v31  ;;  %v253_v37 = vmul.f32 %v376_v32, %v221_v23  ;;  %vm259_vm9 = vweird.f32 %v376_v32  ;;  %vm240_vm13 = vmor %vm238_vm11, %vm239_vm8 }
 0x1b2   :  { %v231_v38 = vsel %vm230_vm5, %v370_v19, %v227_v33  ;;  %v234_v39 = vmul.f32 %v374_v30, %v233_v34  ;;  %vm260_vm14 = vmor %vm258_vm12, %vm259_vm9 }
 0x1b3   :  { %v262_v41 = vmul.f32 %v231_v38, %v194_v57  ;;  %v251_v42 = vsel %vm250_vm7, %v372_v21, %v247_v36  ;;  %v254_v43 = vmul.f32 %v376_v32, %v253_v37 }
 0x1b4   :  { %v264_v44 = vmul.f32 %v251_v42, %v465_v58  ;;  %v235_v45 = vmul.f32 0.5, %v234_v39 }
 0x1b5   :  { %v270_v46 = vmul.f32 %v365_v35, %v262_v41  ;;  %v255_v47 = vmul.f32 0.5, %v254_v43 }
 0x1b6   :  { %v272_v48 = vmul.f32 %v365_v35, %v264_v44  ;;  %v236_v49 = vsub.f32 1.5, %v235_v45 }
 0x1b7   :  { %v278_v50 = vadd.f32 %v366_v40, %v270_v46  ;;  %v256_v51 = vsub.f32 1.5, %v255_v47 }
 0x1b8   :  { %v280_v52 = vadd.f32 %v366_v40, %v272_v48  ;;  %v237_v53 = vmul.f32 %v374_v30, %v236_v49 }
 0x1b9   :  { %v282_v54 = vpack.c.bf16 %v278_v50, %v278_v50  ;;  %v257_v55 = vmul.f32 %v376_v32, %v256_v51 }
 0x1ba   :  { %v284_v56 = vpack.c.bf16 %v280_v52, %v280_v52  ;;  %v241_v57 = vsel %vm240_vm13, %v374_v30, %v237_v53 }
 0x1bb   :  { %287 = vst.msk [vmem:[%s512_s6] sm:$0xf] %vm286_vm10, %v282_v54  ;;  %v261_v58 = vsel %vm260_vm14, %v376_v32, %v257_v55  ;;  %v263_v59 = vmul.f32 %v241_v57, %v471_v3 }
 0x1bc   :  { %289 = vst.msk [vmem:[%s512_s6 + $0x8] sm:$0xf] %vm286_vm10, %v284_v56  ;;  %v265_v60 = vmul.f32 %v261_v58, %v473_v4 }
 0x1bd   :  { %v271_v61 = vmul.f32 %v365_v35, %v263_v59 }
 0x1be   :  { %v273_v62 = vmul.f32 %v365_v35, %v265_v60 }
 0x1bf   :  { %v279_v63 = vadd.f32 %v366_v40, %v271_v61 }
 0x1c0   :  { %v281_v0 = vadd.f32 %v366_v40, %v273_v62 }
 0x1c1   :  { %v283_v1 = vpack.c.bf16 %v279_v63, %v279_v63 }
 0x1c2   :  { %v285_v2 = vpack.c.bf16 %v281_v0, %v281_v0 }
 0x1c3   :  { %288 = vst.msk [vmem:[%s512_s6 + $0x4] sm:$0xf] %vm286_vm10, %v283_v1 }
 0x1c4   :  { %290 = vst.msk [vmem:[%s512_s6 + $0xc] sm:$0xf] %vm286_vm10, %v285_v2 }

</bundles_post_ra>
